<compile_context>
chip_gen: v7x
topology: tpu7x:2x2x1
jax: 0.10.0
libtpu: 0.0.40
codegen_flags: <defaults>
</compile_context>

<pallas_src>
import functools

import jax
import jax.numpy as jnp
from jax.experimental import pallas as pl
from jax.experimental.pallas import tpu as pltpu

IN_PLANES = 2048
BN_EPS = 1e-5
BN_MOMENTUM = 0.1
CLS_ALIGN = 256                     # classifier N padded to a multiple of this
VMEM_LIMIT = 32 * 1024 * 1024       # scoped-VMEM budget; safe on v5e/v6e/v7x


def _pick_tile(total, target, align):
    """Largest divisor of `total` that is <= target and a multiple of `align`;
    falls back to `total` itself (a full-extent block always satisfies the
    (8,128) block rule)."""
    target = min(target, total)
    for t in range(target, 0, -1):
        if total % t == 0 and t % align == 0:
            return t
    return total


# -----------------------------------------------------------------------------
# Kernel 1: tiled GAP (+ optional eval-mode BN with running stats).
# -----------------------------------------------------------------------------
def _gap_kernel(apply_bn, inv_hw, feat_ref, *rest):
    """feat_ref: (tb, th, C) feature tile (bf16/f32), C lane-dense.
    acc_ref:  (tb, C) f32 running spatial sum (VMEM scratch).
    out_ref:  (tb, C) f32 — GAP, or BN(GAP) with running stats if apply_bn."""
    if apply_bn:
        gamma_ref, beta_ref, rmean_ref, rvar_ref, out_ref, acc_ref = rest
    else:
        out_ref, acc_ref = rest

    k = pl.program_id(1)

    @pl.when(k == 0)
    def _():
        acc_ref[...] = jnp.zeros_like(acc_ref)

    acc_ref[...] += jnp.sum(feat_ref[...].astype(jnp.float32), axis=1)

    @pl.when(k == pl.num_programs(1) - 1)
    def _():
        gap = acc_ref[...] * inv_hw
        if apply_bn:
            inv = jax.lax.rsqrt(rvar_ref[...] + BN_EPS)
            gap = (gap - rmean_ref[...]) * (inv * gamma_ref[...]) + beta_ref[...]
        out_ref[...] = gap


def _gap_head(feat, bn_params=None):
    """feat: (B, HW, C).  bn_params: None, or (gamma, beta, rmean, rvar) each
    shaped (1, C) f32 -> eval-mode BN with running stats is fused in."""
    B, HW, C = feat.shape
    apply_bn = bn_params is not None

    # batch tile: multiple of 8 or the full batch (satisfies the (8,128) rule
    # on the (tb, C) output / scratch blocks for any B).
    tb = _pick_tile(B, 8, 8)

    itemsize = jnp.dtype(feat.dtype).itemsize
    row_align = 16 if itemsize == 2 else 8     # bf16 packs 16 rows per vreg
    # cap each (tb, th, C) feature buffer at ~4 MiB: double-buffered inputs
    # (~8 MiB) + a worst-case materialized f32 cast temp (~8 MiB) + acc/out
    # stay well under the 32 MiB scoped-VMEM budget on all generations.
    th_target = max(row_align, (4 * 1024 * 1024) // max(1, tb * C * itemsize))
    th = _pick_tile(HW, th_target, row_align)

    grid = (B // tb, HW // th)

    in_specs = [pl.BlockSpec((tb, th, C), lambda i, k: (i, k, 0))]
    args = (feat,)
    if apply_bn:
        in_specs += [pl.BlockSpec((1, C), lambda i, k: (0, 0))] * 4
        args = args + tuple(bn_params)

    kernel = functools.partial(_gap_kernel, apply_bn, 1.0 / HW)
    return pl.pallas_call(
        kernel,
        grid=grid,
        in_specs=in_specs,
        out_specs=pl.BlockSpec((tb, C), lambda i, k: (i, 0)),
        out_shape=jax.ShapeDtypeStruct((B, C), jnp.float32),
        scratch_shapes=[pltpu.VMEM((tb, C), jnp.float32)],
        compiler_params=pltpu.CompilerParams(
            dimension_semantics=("parallel", "arbitrary"),
            vmem_limit_bytes=VMEM_LIMIT),
    )(*args)


# -----------------------------------------------------------------------------
# Kernel 2 (training): batch-stat BN + running-stat update.  Tiny (B, C)
# problem -> single invocation, whole arrays in VMEM.  Emits bn feat in bf16
# exactly once so the classifier kernel consumes it directly.
# -----------------------------------------------------------------------------
def _bn_train_kernel(momentum, unbiased_scale,
                     gfeat_ref, gamma_ref, beta_ref, rmean_ref, rvar_ref,
                     bn_ref, nrm_ref, nrv_ref):
    gap = gfeat_ref[...]                                            # (B, C) f32
    mu = jnp.mean(gap, axis=0, keepdims=True)                       # (1, C)
    var = jnp.mean((gap - mu) ** 2, axis=0, keepdims=True)          # biased
    inv = jax.lax.rsqrt(var + BN_EPS)
    bn = (gap - mu) * (inv * gamma_ref[...]) + beta_ref[...]
    bn_ref[...] = bn.astype(bn_ref.dtype)                           # one bf16 cast
    # PyTorch BatchNorm1d running-stat update (momentum, unbiased var).
    nrm_ref[...] = (1.0 - momentum) * rmean_ref[...] + momentum * mu
    nrv_ref[...] = (1.0 - momentum) * rvar_ref[...] + momentum * (var * unbiased_scale)


def _bn_train(gfeat, gamma, beta, rmean, rvar, *, momentum, unbiased_scale):
    B, C = gfeat.shape
    kernel = functools.partial(_bn_train_kernel, momentum, unbiased_scale)
    return pl.pallas_call(
        kernel,
        out_shape=(
            jax.ShapeDtypeStruct((B, C), jnp.bfloat16),   # bn features (bf16)
            jax.ShapeDtypeStruct((1, C), jnp.float32),    # new running mean
            jax.ShapeDtypeStruct((1, C), jnp.float32),    # new running var
        ),
        compiler_params=pltpu.CompilerParams(vmem_limit_bytes=VMEM_LIMIT),
    )(gfeat, gamma, beta, rmean, rvar)


# -----------------------------------------------------------------------------
# Kernel 3 (training): classifier matmul (bias=False), tiled over the padded
# lane-dense class axis.  Pure matmul -> grid axis is "parallel" (megacore).
# -----------------------------------------------------------------------------
def _classifier_kernel(bn_ref, wt_ref, cls_ref):
    """bn_ref: (B, C) bf16.  wt_ref: (tn, C) bf16.  cls_ref: (B, tn) f32."""
    cls_ref[...] = jax.lax.dot_general(
        bn_ref[...], wt_ref[...],
        dimension_numbers=(((1,), (1,)), ((), ())),
        preferred_element_type=jnp.float32)


def _classifier(bn_bf16, wt_padded):
    B, C = bn_bf16.shape
    n_pad = wt_padded.shape[0]
    tn = _pick_tile(n_pad, 512, CLS_ALIGN)     # 512 when it divides, else 256
    grid = (n_pad // tn,)
    return pl.pallas_call(
        _classifier_kernel,
        grid=grid,
        in_specs=[
            pl.BlockSpec((B, C), lambda j: (0, 0)),
            pl.BlockSpec((tn, C), lambda j: (j, 0)),
        ],
        out_specs=pl.BlockSpec((B, tn), lambda j: (0, j)),
        out_shape=jax.ShapeDtypeStruct((B, n_pad), jnp.float32),
        compiler_params=pltpu.CompilerParams(
            dimension_semantics=("parallel",),
            vmem_limit_bytes=VMEM_LIMIT),
    )(bn_bf16, wt_padded)


# -----------------------------------------------------------------------------
# Wrapper: the `Baseline.forward` head.
# -----------------------------------------------------------------------------
def baseline_forward(feature_nhwc, params, *, neck='bnneck', neck_feat='after',
                     training=False, bn_momentum=BN_MOMENTUM):
    """feature_nhwc: backbone output in NHWC (TPU-native conv layout) so that
    channels are lane-dense with a zero-cost reshape (no transpose copy)."""
    assert neck == 'bnneck', "only the 'bnneck' configuration is implemented"
    B, H, W, C = feature_nhwc.shape
    HW = H * W
    num_classes = params['classifier_w'].shape[0]

    feat = feature_nhwc.reshape(B, HW, C)                    # free reshape
    gamma = params['bn_gamma'].reshape(1, C).astype(jnp.float32)
    beta = params['bn_beta'].reshape(1, C).astype(jnp.float32)
    rmean = params['bn_running_mean'].reshape(1, C).astype(jnp.float32)
    rvar = params['bn_running_var'].reshape(1, C).astype(jnp.float32)

    if not training:
        # Eval: only the tensor the caller consumes is computed / stored; in
        # the 'before' case the BN params are not even DMA'd.
        if neck_feat == 'after':
            return _gap_head(feat, (gamma, beta, rmean, rvar))
        return _gap_head(feat, None)

    # ---- training path ----
    global_feat = _gap_head(feat, None)                      # (B, C) f32 GAP

    # Batch-stat BN + PyTorch running-stat update (momentum=0.1, unbiased var).
    # TODO(synk): for B == 1 PyTorch's unbiased var is inf/NaN; we clamp to
    # B-1 >= 1 instead.
    unbiased_scale = float(B) / float(max(B - 1, 1))
    bn_feat_bf16, new_rmean, new_rvar = _bn_train(
        global_feat, gamma, beta, rmean, rvar,
        momentum=bn_momentum, unbiased_scale=unbiased_scale)

    # Classifier weight: (n_pad, C) bf16, pre-padded ONCE in init_params.
    wt = params.get('classifier_w_bf16_padded')
    if wt is None:  # fallback for callers that only supply the f32 weight
        n_pad = max(CLS_ALIGN, ((num_classes + CLS_ALIGN - 1) // CLS_ALIGN) * CLS_ALIGN)
        wt = jnp.zeros((n_pad, C), jnp.bfloat16).at[:num_classes, :].set(
            params['classifier_w'].astype(jnp.bfloat16))

    cls_padded = _classifier(bn_feat_bf16, wt)
    cls_score = cls_padded[:, :num_classes]

    # TODO(synk): saliency `mask` (third return of the PyTorch training path)
    # comes from the unavailable SalieResNet backbone; omitted.
    return cls_score, global_feat, (new_rmean.reshape(C), new_rvar.reshape(C))


def init_params(key, num_classes, in_planes=IN_PLANES):
    # bnneck init per weights_init_kaiming: BN weight=1, bias=0 (running stats 0/1).
    # classifier per weights_init_classifier: normal(std=0.001), no bias.
    w = 0.001 * jax.random.normal(key, (num_classes, in_planes), jnp.float32)
    # Pad + cast the classifier weight once (persistent), so the forward pass
    # never re-reads / re-writes it.
    n_pad = max(CLS_ALIGN, ((num_classes + CLS_ALIGN - 1) // CLS_ALIGN) * CLS_ALIGN)
    w_pad = jnp.zeros((n_pad, in_planes), jnp.bfloat16).at[:num_classes, :].set(
        w.astype(jnp.bfloat16))
    return {
        'bn_gamma': jnp.ones((in_planes,), jnp.float32),
        'bn_beta': jnp.zeros((in_planes,), jnp.float32),
        'bn_running_mean': jnp.zeros((in_planes,), jnp.float32),
        'bn_running_var': jnp.ones((in_planes,), jnp.float32),
        'classifier_w': w,
        'classifier_w_bf16_padded': w_pad,
    }


if __name__ == "__main__":
    key = jax.random.PRNGKey(0)
    k_feat, k_params = jax.random.split(key)

    B, H, W, C = 2, 8, 8, IN_PLANES
    num_classes = 128

    # backbone feature in NHWC, bf16 (production dtype for the memory-bound GAP)
    feature = jax.random.normal(k_feat, (B, H, W, C), jnp.float32).astype(jnp.bfloat16)
    params = init_params(k_params, num_classes)

    # Eval paths.
    feat_after = jax.block_until_ready(
        baseline_forward(feature, params, training=False, neck_feat='after'))
    feat_before = jax.block_until_ready(
        baseline_forward(feature, params, training=False, neck_feat='before'))

    # Training path: (cls_score, global_feat, updated running stats).
    cls_score, global_feat, (new_rm, new_rv) = baseline_forward(
        feature, params, training=True)
    jax.block_until_ready((cls_score, global_feat, new_rm, new_rv))

    # ---- pure-JAX reference checks ----
    f32 = feature.astype(jnp.float32).reshape(B, H * W, C)
    gap_ref = jnp.mean(f32, axis=1)                                        # (B, C)

    gamma = params['bn_gamma']
    beta = params['bn_beta']
    rmean = params['bn_running_mean']
    rvar = params['bn_running_var']

    # eval BN (running stats)
    bn_eval_ref = (gap_ref - rmean) / jnp.sqrt(rvar + BN_EPS) * gamma + beta
    assert feat_after.shape == (B, C)
    assert jnp.allclose(feat_after, bn_eval_ref, atol=1e-3, rtol=1e-3)
    assert jnp.allclose(feat_before, gap_ref, atol=1e-3, rtol=1e-3)
    assert jnp.allclose(global_feat, gap_ref, atol=1e-3, rtol=1e-3)

    # training BN (biased batch stats) + classifier (bf16 weight, f32 accum)
    mu = jnp.mean(gap_ref, axis=0)
    var = jnp.mean((gap_ref - mu) ** 2, axis=0)
    bn_train_ref = (gap_ref - mu) / jnp.sqrt(var + BN_EPS) * gamma + beta
    w_ref = params['classifier_w'].astype(jnp.bfloat16).astype(jnp.float32)
    cls_ref = bn_train_ref @ w_ref.T
    assert cls_score.shape == (B, num_classes)
    assert jnp.allclose(cls_score, cls_ref, atol=5e-3, rtol=5e-2)

    # running-stat update (PyTorch semantics: momentum=0.1, unbiased var)
    nrm_ref = (1.0 - BN_MOMENTUM) * rmean + BN_MOMENTUM * mu
    nrv_ref = (1.0 - BN_MOMENTUM) * rvar + BN_MOMENTUM * (var * B / (B - 1))
    assert jnp.allclose(new_rm, nrm_ref, atol=1e-3, rtol=1e-3)
    assert jnp.allclose(new_rv, nrv_ref, atol=1e-3, rtol=1e-3)

    print("KERNEL_OK")
</pallas_src>

<mosaic_0001>
module attributes {stable_mosaic.version = 11 : i64} {
  func.func @_gap_kernel(%arg0: i32, %arg1: i32, %arg2: memref<2x64x2048xbf16, #tpu.memory_space<vmem>>, %arg3: memref<1x2048xf32, #tpu.memory_space<vmem>>, %arg4: memref<1x2048xf32, #tpu.memory_space<vmem>>, %arg5: memref<1x2048xf32, #tpu.memory_space<vmem>>, %arg6: memref<1x2048xf32, #tpu.memory_space<vmem>>, %arg7: memref<2x2048xf32, #tpu.memory_space<vmem>>, %arg8: memref<2x2048xf32, #tpu.memory_space<vmem>>) attributes {dimension_semantics = [#tpu.dimension_semantics<parallel>, #tpu.dimension_semantics<arbitrary>], iteration_bounds = array<i64: 1, 1>, scalar_prefetch = 0 : i64, scratch_operands = 1 : i64, tpu.core_type = #tpu.core_type<tc>, window_params = [{transform_indices = @transform_0, window_bounds = array<i64: 2, 64, 2048>}, {pipeline_mode = #tpu.pipeline_mode<synchronous>, transform_indices = @transform_1, window_bounds = array<i64: 1, 2048>}, {pipeline_mode = #tpu.pipeline_mode<synchronous>, transform_indices = @transform_2, window_bounds = array<i64: 1, 2048>}, {pipeline_mode = #tpu.pipeline_mode<synchronous>, transform_indices = @transform_3, window_bounds = array<i64: 1, 2048>}, {pipeline_mode = #tpu.pipeline_mode<synchronous>, transform_indices = @transform_4, window_bounds = array<i64: 1, 2048>}, {transform_indices = @transform_5, window_bounds = array<i64: 2, 2048>}]} {
    %c0_i32 = arith.constant 0 : i32
    %0 = arith.cmpi eq, %arg1, %c0_i32 : i32
    %1 = arith.extui %0 : i1 to i32
    %c0_i32_0 = arith.constant 0 : i32
    %2 = arith.cmpi ne, %1, %c0_i32_0 : i32
    scf.if %2 {
      %cst_9 = arith.constant 0.000000e+00 : f32
      %12 = vector.broadcast %cst_9 : f32 to vector<2x2048xf32>
      %c0_10 = arith.constant 0 : index
      %c0_11 = arith.constant 0 : index
      %13 = vector.load %arg8[%c0_10, %c0_11] : memref<2x2048xf32, #tpu.memory_space<vmem>>, vector<2x2048xf32>
      tpu.vector_store %arg8[%c0_10, %c0_11], %12 {strides = array<i32>} : memref<2x2048xf32, #tpu.memory_space<vmem>>, vector<2x2048xf32>,
    } else {
    }
    %c0 = arith.constant 0 : index
    %c0_1 = arith.constant 0 : index
    %3 = vector.load %arg8[%c0, %c0_1] : memref<2x2048xf32, #tpu.memory_space<vmem>>, vector<2x2048xf32>
    %c0_2 = arith.constant 0 : index
    %c0_3 = arith.constant 0 : index
    %c0_4 = arith.constant 0 : index
    %4 = vector.load %arg2[%c0_2, %c0_3, %c0_4] : memref<2x64x2048xbf16, #tpu.memory_space<vmem>>, vector<2x64x2048xbf16>
    %5 = arith.extf %4 : vector<2x64x2048xbf16> to vector<2x64x2048xf32>
    %cst = arith.constant dense<0.000000e+00> : vector<2x2048xf32>
    %6 = vector.multi_reduction <add>, %5, %cst [1] : vector<2x64x2048xf32> to vector<2x2048xf32>
    %7 = arith.addf %3, %6 : vector<2x2048xf32>
    %c0_5 = arith.constant 0 : index
    %c0_6 = arith.constant 0 : index
    %8 = vector.load %arg8[%c0_5, %c0_6] : memref<2x2048xf32, #tpu.memory_space<vmem>>, vector<2x2048xf32>
    tpu.vector_store %arg8[%c0_5, %c0_6], %7 {strides = array<i32>} : memref<2x2048xf32, #tpu.memory_space<vmem>>, vector<2x2048xf32>,
    %c0_i32_7 = arith.constant 0 : i32
    %9 = arith.cmpi eq, %arg1, %c0_i32_7 : i32
    %10 = arith.extui %9 : i1 to i32
    %c0_i32_8 = arith.constant 0 : i32
    %11 = arith.cmpi ne, %10, %c0_i32_8 : i32
    scf.if %11 {
      %c0_9 = arith.constant 0 : index
      %c0_10 = arith.constant 0 : index
      %12 = vector.load %arg8[%c0_9, %c0_10] : memref<2x2048xf32, #tpu.memory_space<vmem>>, vector<2x2048xf32>
      %cst_11 = arith.constant 1.562500e-02 : f32
      %13 = vector.broadcast %cst_11 : f32 to vector<2x2048xf32>
      %14 = arith.mulf %12, %13 : vector<2x2048xf32>
      %c0_12 = arith.constant 0 : index
      %c0_13 = arith.constant 0 : index
      %15 = vector.load %arg6[%c0_12, %c0_13] : memref<1x2048xf32, #tpu.memory_space<vmem>>, vector<1x2048xf32>
      %cst_14 = arith.constant 9.99999974E-6 : f32
      %16 = vector.broadcast %cst_14 : f32 to vector<1x2048xf32>
      %17 = arith.addf %15, %16 : vector<1x2048xf32>
      %18 = math.rsqrt %17 : vector<1x2048xf32>
      %c0_15 = arith.constant 0 : index
      %c0_16 = arith.constant 0 : index
      %19 = vector.load %arg5[%c0_15, %c0_16] : memref<1x2048xf32, #tpu.memory_space<vmem>>, vector<1x2048xf32>
      %20 = vector.broadcast %19 : vector<1x2048xf32> to vector<2x2048xf32>
      %21 = arith.subf %14, %20 : vector<2x2048xf32>
      %c0_17 = arith.constant 0 : index
      %c0_18 = arith.constant 0 : index
      %22 = vector.load %arg3[%c0_17, %c0_18] : memref<1x2048xf32, #tpu.memory_space<vmem>>, vector<1x2048xf32>
      %23 = arith.mulf %18, %22 : vector<1x2048xf32>
      %24 = vector.broadcast %23 : vector<1x2048xf32> to vector<2x2048xf32>
      %25 = arith.mulf %21, %24 : vector<2x2048xf32>
      %c0_19 = arith.constant 0 : index
      %c0_20 = arith.constant 0 : index
      %26 = vector.load %arg4[%c0_19, %c0_20] : memref<1x2048xf32, #tpu.memory_space<vmem>>, vector<1x2048xf32>
      %27 = vector.broadcast %26 : vector<1x2048xf32> to vector<2x2048xf32>
      %28 = arith.addf %25, %27 : vector<2x2048xf32>
      %c0_21 = arith.constant 0 : index
      %c0_22 = arith.constant 0 : index
      %29 = vector.load %arg7[%c0_21, %c0_22] : memref<2x2048xf32, #tpu.memory_space<vmem>>, vector<2x2048xf32>
      tpu.vector_store %arg7[%c0_21, %c0_22], %28 {strides = array<i32>} : memref<2x2048xf32, #tpu.memory_space<vmem>>, vector<2x2048xf32>,
    } else {
    }
    return
  }
  func.func @transform_0(%arg0: i32, %arg1: i32) -> (i32, i32, i32) {
    %c0_i32 = arith.constant 0 : i32
    %c0_i32_0 = arith.constant 0 : i32
    return %arg0, %arg1, %c0_i32 : i32, i32, i32
  }
  func.func @transform_1(%arg0: i32, %arg1: i32) -> (i32, i32) {
    %c0_i32 = arith.constant 0 : i32
    %c0_i32_0 = arith.constant 0 : i32
    %c0_i32_1 = arith.constant 0 : i32
    return %c0_i32, %c0_i32_0 : i32, i32
  }
  func.func @transform_2(%arg0: i32, %arg1: i32) -> (i32, i32) {
    %c0_i32 = arith.constant 0 : i32
    %c0_i32_0 = arith.constant 0 : i32
    %c0_i32_1 = arith.constant 0 : i32
    return %c0_i32, %c0_i32_0 : i32, i32
  }
  func.func @transform_3(%arg0: i32, %arg1: i32) -> (i32, i32) {
    %c0_i32 = arith.constant 0 : i32
    %c0_i32_0 = arith.constant 0 : i32
    %c0_i32_1 = arith.constant 0 : i32
    return %c0_i32, %c0_i32_0 : i32, i32
  }
  func.func @transform_4(%arg0: i32, %arg1: i32) -> (i32, i32) {
    %c0_i32 = arith.constant 0 : i32
    %c0_i32_0 = arith.constant 0 : i32
    %c0_i32_1 = arith.constant 0 : i32
    return %c0_i32, %c0_i32_0 : i32, i32
  }
  func.func @transform_5(%arg0: i32, %arg1: i32) -> (i32, i32) {
    %c0_i32 = arith.constant 0 : i32
    %c0_i32_0 = arith.constant 0 : i32
    return %arg0, %c0_i32 : i32, i32
  }
}

</mosaic_0001>

<bundles_post_ra>
// kernel: tpu_custom_call.1
= control target key start
LH: loop header
LB: loop body
LE: loop exit
PB: predicated region body
PF: predicated region fallthrough
CT: control target
= control target key end

     0   :  { %10 = vsyncpa [#allocation4], 0  ;;  %s3109_s0 = inlined_call_operand.hbm [shape: bf16[2,64,2048], index: 0, kind: input, shape index: {}]   ;;  %s3110_s1 = inlined_call_operand.hbm [shape: f32[1,2048], index: 1, kind: input, shape index: {}]   ;;  %s3111_s2 = inlined_call_operand.hbm [shape: f32[1,2048], index: 2, kind: input, shape index: {}]   ;;  %s3112_s3 = inlined_call_operand.hbm [shape: f32[1,2048], index: 3, kind: input, shape index: {}]   ;;  %s3113_s4 = inlined_call_operand.hbm [shape: f32[1,2048], index: 4, kind: input, shape index: {}]   ;;  %s3114_s5 = inlined_call_operand.hbm [shape: f32[2,2048], index: 5, kind: output, shape index: {}]  }
   0x1   :  { %11 = vsyncpa [#allocation7], 0 }
   0x2   :  { %12 = vsyncpa [#allocation10], 0 }
   0x3   :  { %13 = vsyncpa [#allocation5], 0  ;;  %s1732_s18 = smov [#allocation6]   ;;  %s1733_s20 = smov [#allocation9]  }
   0x4   :  { %s32_s19 = sshll.u32 %s1732_s18, 4  ;;  %s52_s21 = sshll.u32 %s1733_s20, 4  ;;  %s33_s19 = int_to_ptr.vmem [resolvable:$true] %s32_s19  ;;  %s53_s21 = int_to_ptr.vmem [resolvable:$true] %s52_s21 }
   0x5   :  { %s1592_s24 = scalar_lea.hbm %s3110_s1, 256 }
   0x6   :  { %p1593_p0 = scmp.ne.s32.totalorder %s3110_s1, %s1592_s24  ;;  %p1596_p1 = scmp.lt.u32.totalorder %s1592_s24, %s3110_s1 }
   0x8   :  { %p1598_p2 = pnand %p1596_p1, %p1593_p0 }
   0xa   :  { %1601 = shalt.err (!%p1598_p2)
}
   0xb   :  { %s1602_s29 = scalar_lea.vmem %s33_s19, 256  ;;  %p1607_p4 = scmp.lt.s32.totalorder %s33_s19, %s33_s19 }
   0xc   :  { %p1603_p3 = scmp.ne.s32.totalorder %s33_s19, %s1602_s29  ;;  %p1608_p5 = scmp.lt.s32.totalorder %s1602_s29, %s1602_s29 }
   0xe   :  { %p1609_p6 = por %p1608_p5, %p1607_p4 }
  0x10   :  { %p1610_p7 = pnand %p1609_p6, %p1603_p3 }
  0x12   :  { %1613 = shalt.err (!%p1610_p7)
}
  0x13   :  { %35 = dma.hbm_to_vmem [thread:$0]  %s3110_s1, 256, %s33_s19, [#allocation7]  }
  0x14   :  { %s1614_s9 = scalar_lea.hbm %s3112_s3, 256 }
  0x15   :  { %p1615_p8 = scmp.ne.s32.totalorder %s3112_s3, %s1614_s9  ;;  %p1618_p9 = scmp.lt.u32.totalorder %s1614_s9, %s3112_s3 }
  0x17   :  { %p1620_p10 = pnand %p1618_p9, %p1615_p8 }
  0x19   :  { %1623 = shalt.err (!%p1620_p10)
}
  0x1a   :  { %s1624_s14 = scalar_lea.vmem %s53_s21, 256  ;;  %p1629_p12 = scmp.lt.s32.totalorder %s53_s21, %s53_s21 }
  0x1b   :  { %p1625_p11 = scmp.ne.s32.totalorder %s53_s21, %s1624_s14  ;;  %p1630_p13 = scmp.lt.s32.totalorder %s1624_s14, %s1624_s14 }
  0x1d   :  { %p1631_p0 = por %p1630_p13, %p1629_p12 }
  0x1f   :  { %p1632_p1 = pnand %p1631_p0, %p1625_p11 }
  0x21   :  { %1635 = shalt.err (!%p1632_p1)
}
  0x22   :  { %55 = dma.hbm_to_vmem [thread:$0]  %s3112_s3, 256, %s53_s21, [#allocation10]  }
  0x23   :  { %s1734_s16 = smov [#allocation3]   ;;  %s1636_s20 = scalar_lea.hbm %s3109_s0, 16384 }
  0x24   :  { %s19_s17 = sshll.u32 %s1734_s16, 4  ;;  %p1637_p2 = scmp.ne.s32.totalorder %s3109_s0, %s1636_s20  ;;  %s20_s17 = int_to_ptr.vmem [resolvable:$true] %s19_s17 }
  0x25   :  { %p1640_p3 = scmp.lt.u32.totalorder %s1636_s20, %s3109_s0 }
  0x27   :  { %p1642_p4 = pnand %p1640_p3, %p1637_p2 }
  0x29   :  { %1645 = shalt.err (!%p1642_p4)
}
  0x2a   :  { %s1646_s26 = scalar_lea.vmem %s20_s17, 16384  ;;  %p1651_p6 = scmp.lt.s32.totalorder %s20_s17, %s20_s17 }
  0x2b   :  { %p1647_p5 = scmp.ne.s32.totalorder %s20_s17, %s1646_s26  ;;  %p1652_p7 = scmp.lt.s32.totalorder %s1646_s26, %s1646_s26 }
  0x2d   :  { %p1653_p8 = por %p1652_p7, %p1651_p6 }
  0x2f   :  { %p1654_p9 = pnand %p1653_p8, %p1647_p5 }
  0x31   :  { %1657 = shalt.err (!%p1654_p9)
}
  0x32   :  { %s1735_s3 = smov 1024   ;;  %s1736_s21 = smov 64  }
  0x33   :  { %25 = dma.hbm_to_vmem [thread:$0]  %s3109_s0, 16384, %s20_s17, [#allocation4], %s1735_s3, %s1735_s3, %s1736_s21  }
  0x34   :  { %s1737_s29 = smov [#allocation8]   ;;  %s1738_s6 = smov [#allocation11]  }
  0x35   :  { %s42_s30 = sshll.u32 %s1737_s29, 4  ;;  %s62_s7 = sshll.u32 %s1738_s6, 4  ;;  %s43_s30 = int_to_ptr.vmem [resolvable:$true] %s42_s30  ;;  %s63_s7 = int_to_ptr.vmem [resolvable:$true] %s62_s7 }
  0x36   :  { %s1658_s10 = scalar_lea.hbm %s3111_s2, 256 }
  0x37   :  { %p1659_p10 = scmp.ne.s32.totalorder %s3111_s2, %s1658_s10  ;;  %p1662_p11 = scmp.lt.u32.totalorder %s1658_s10, %s3111_s2 }
  0x39   :  { %p1664_p12 = pnand %p1662_p11, %p1659_p10 }
  0x3b   :  { %1667 = shalt.err (!%p1664_p12)
}
  0x3c   :  { %s1668_s0 = scalar_lea.vmem %s43_s30, 256  ;;  %p1673_p0 = scmp.lt.s32.totalorder %s43_s30, %s43_s30 }
  0x3d   :  { %p1669_p13 = scmp.ne.s32.totalorder %s43_s30, %s1668_s0  ;;  %p1674_p1 = scmp.lt.s32.totalorder %s1668_s0, %s1668_s0 }
  0x3f   :  { %p1675_p2 = por %p1674_p1, %p1673_p0 }
  0x41   :  { %p1676_p3 = pnand %p1675_p2, %p1669_p13 }
  0x43   :  { %1679 = shalt.err (!%p1676_p3)
}
  0x44   :  { %45 = dma.hbm_to_vmem [thread:$0]  %s3111_s2, 256, %s43_s30, [#allocation7]  }
  0x45   :  { %s1680_s18 = scalar_lea.hbm %s3113_s4, 256 }
  0x46   :  { %p1681_p4 = scmp.ne.s32.totalorder %s3113_s4, %s1680_s18  ;;  %p1684_p5 = scmp.lt.u32.totalorder %s1680_s18, %s3113_s4 }
  0x48   :  { %p1686_p6 = pnand %p1684_p5, %p1681_p4 }
  0x4a   :  { %1689 = shalt.err (!%p1686_p6)
}
  0x4b   :  { %s1690_s24 = scalar_lea.vmem %s63_s7, 256  ;;  %p1695_p8 = scmp.lt.s32.totalorder %s63_s7, %s63_s7 }
  0x4c   :  { %p1691_p7 = scmp.ne.s32.totalorder %s63_s7, %s1690_s24  ;;  %p1696_p9 = scmp.lt.s32.totalorder %s1690_s24, %s1690_s24 }
  0x4e   :  { %p1697_p10 = por %p1696_p9, %p1695_p8 }
  0x50   :  { %p1698_p11 = pnand %p1697_p10, %p1691_p7 }
  0x52   :  { %1701 = shalt.err (!%p1698_p11)
}
  0x53   :  { %65 = dma.hbm_to_vmem [thread:$0]  %s3113_s4, 256, %s63_s7, [#allocation10]  }
  0x54   :  { %1724 = dma.done.wait [#allocation4], 16384  }
  0x55   :  { %1725 = vsyncadd [#allocation4], 4294950912 }
  0x56   :  { %1726 = dma.done.wait [#allocation7], 512  }
  0x57   :  { %1727 = vsyncadd [#allocation7], 4294966784 }
  0x58   :  { %1728 = dma.done.wait [#allocation10], 512  }
  0x59   :  { %1729 = vsyncadd [#allocation10], 4294966784  ;;  %v1831_v0 = vld [vmem:[#allocation3] sm:$0xff]  ;;  %v1833_v1 = vld [vmem:[#allocation3 + $0x8] sm:$0xff]  ;;  %vm1066_vm0 = vcmask 1041409   ;;  %vm1068_vm1 = vcmask 1043459  }
  0x5a   :  { %v1835_v2 = vld [vmem:[#allocation3 + $0x10] sm:$0xff]  ;;  %v1837_v3 = vld [vmem:[#allocation3 + $0x18] sm:$0xff]  ;;  %v1839_v4 = vld [vmem:[#allocation3 + $0x20] sm:$0xff]  ;;  %vm1070_vm2 = vcmask 1045509   ;;  %vm1072_vm3 = vcmask 1047559   ;;  %s1740_s4 = smov [#allocation12]  }
  0x5b   :  { %v1841_v5 = vld [vmem:[#allocation3 + $0x28] sm:$0xff]  ;;  %v1846_v9 = vld [vmem:[#allocation3 + $0x30] sm:$0xff]  ;;  %v1848_v10 = vld [vmem:[#allocation3 + $0x38] sm:$0xff]  ;;  %s1568_s26 = sshll.u32 %s1740_s4, 4  ;;  %s1569_s26 = int_to_ptr.vmem [resolvable:$true] %s1568_s26 }
  0x5c   :  { %v1850_v11 = vld [vmem:[#allocation3 + $0x40] sm:$0xff]  ;;  %v1856_v16 = vld [vmem:[#allocation3 + $0x48] sm:$0xff]  ;;  %v1858_v17 = vld [vmem:[#allocation3 + $0x50] sm:$0xff]  ;;  %s1702_s3 = scalar_lea.vmem %s1569_s26, 512  ;;  %p1707_p13 = scmp.lt.s32.totalorder %s1569_s26, %s1569_s26 }
  0x5d   :  { %v1860_v18 = vld [vmem:[#allocation3 + $0x58] sm:$0xff]  ;;  %v1866_v23 = vld [vmem:[#allocation3 + $0x60] sm:$0xff]  ;;  %v1868_v24 = vld [vmem:[#allocation3 + $0x68] sm:$0xff]  ;;  %p1703_p12 = scmp.ne.s32.totalorder %s1569_s26, %s1702_s3  ;;  %p1708_p0 = scmp.lt.s32.totalorder %s1702_s3, %s1702_s3 }
  0x5e   :  { %v1874_v29 = vld [vmem:[#allocation3 + $0x70] sm:$0xff]  ;;  %v1876_v30 = vld [vmem:[#allocation3 + $0x78] sm:$0xff]  ;;  %v1882_v35 = vld [vmem:[#allocation3 + $0x80] sm:$0xff] }
  0x5f   :  { %v1884_v36 = vld [vmem:[#allocation3 + $0x88] sm:$0xff]  ;;  %v1890_v41 = vld [vmem:[#allocation3 + $0x90] sm:$0xff]  ;;  %v1892_v42 = vld [vmem:[#allocation3 + $0x98] sm:$0xff]  ;;  %p1709_p1 = por %p1708_p0, %p1707_p13 }
  0x60   :  { %v1898_v47 = vld [vmem:[#allocation3 + $0xa0] sm:$0xff]  ;;  %v1900_v48 = vld [vmem:[#allocation3 + $0xa8] sm:$0xff]  ;;  %v1906_v53 = vld [vmem:[#allocation3 + $0xb0] sm:$0xff] }
  0x61   :  { %v1908_v54 = vld [vmem:[#allocation3 + $0xb8] sm:$0xff]  ;;  %v1914_v59 = vld [vmem:[#allocation3 + $0xc0] sm:$0xff]  ;;  %v1916_v60 = vld [vmem:[#allocation3 + $0xc8] sm:$0xff]  ;;  %p1710_p2 = pnand %p1709_p1, %p1703_p12 }
  0x62   :  { %v1922_v52 = vld [vmem:[#allocation3 + $0xd0] sm:$0xff]  ;;  %v1924_v55 = vld [vmem:[#allocation3 + $0xd8] sm:$0xff]  ;;  %v1930_v26 = vld [vmem:[#allocation3 + $0xe0] sm:$0xff] }
  0x63   :  { %3273 = vst [vmem:[#allocation17_spill] sm:$0xff] %v1930_v26  ;;  %v1932_v49 = vld [vmem:[#allocation3 + $0xe8] sm:$0xff]  ;;  %v1938_v21 = vld [vmem:[#allocation3 + $0xf0] sm:$0xff]  ;;  %v1940_v44 = vld [vmem:[#allocation3 + $0xf8] sm:$0xff] }
  0x64   :  { %3274 = vst [vmem:[#allocation18_spill] sm:$0xff] %v1932_v49  ;;  %3275 = vst [vmem:[#allocation19_spill] sm:$0xff] %v1938_v21  ;;  %v1946_v28 = vld [vmem:[#allocation3 + $0x100] sm:$0xff]  ;;  %v1948_v25 = vld [vmem:[#allocation3 + $0x108] sm:$0xff] }
  0x65   :  { %3276 = vst [vmem:[#allocation20_spill] sm:$0xff] %v1940_v44  ;;  %v1954_v63 = vld [vmem:[#allocation3 + $0x110] sm:$0xff]  ;;  %v1956_v27 = vld [vmem:[#allocation3 + $0x118] sm:$0xff]  ;;  %v1962_v61 = vld [vmem:[#allocation3 + $0x120] sm:$0xff] }
  0x66   :  { %3277 = vst [vmem:[#allocation21_spill] sm:$0xff] %v1962_v61  ;;  %v1964_v22 = vld [vmem:[#allocation3 + $0x128] sm:$0xff]  ;;  %v1970_v57 = vld [vmem:[#allocation3 + $0x130] sm:$0xff]  ;;  %v1972_v51 = vld [vmem:[#allocation3 + $0x138] sm:$0xff] }
  0x67   :  { %3278 = vst [vmem:[#allocation22_spill] sm:$0xff] %v1964_v22  ;;  %3279 = vst [vmem:[#allocation23_spill] sm:$0xff] %v1970_v57  ;;  %v1978_v43 = vld [vmem:[#allocation3 + $0x140] sm:$0xff]  ;;  %v1980_v46 = vld [vmem:[#allocation3 + $0x148] sm:$0xff] }
  0x68   :  { %3280 = vst [vmem:[#allocation24_spill] sm:$0xff] %v1972_v51  ;;  %v1986_v40 = vld [vmem:[#allocation3 + $0x150] sm:$0xff]  ;;  %v1988_v50 = vld [vmem:[#allocation3 + $0x158] sm:$0xff]  ;;  %v1994_v39 = vld [vmem:[#allocation3 + $0x160] sm:$0xff] }
  0x69   :  { %3281 = vst [vmem:[#allocation25_spill] sm:$0xff] %v1994_v39  ;;  %v1996_v45 = vld [vmem:[#allocation3 + $0x168] sm:$0xff]  ;;  %v2002_v38 = vld [vmem:[#allocation3 + $0x170] sm:$0xff]  ;;  %v2004_v20 = vld [vmem:[#allocation3 + $0x178] sm:$0xff] }
  0x6a   :  { %3282 = vst [vmem:[#allocation26_spill] sm:$0xff] %v1996_v45  ;;  %3283 = vst [vmem:[#allocation27_spill] sm:$0xff] %v2002_v38  ;;  %v2010_v37 = vld [vmem:[#allocation3 + $0x180] sm:$0xff]  ;;  %v2012_v31 = vld [vmem:[#allocation3 + $0x188] sm:$0xff] }
  0x6b   :  { %3284 = vst [vmem:[#allocation28_spill] sm:$0xff] %v2004_v20  ;;  %v2018_v34 = vld [vmem:[#allocation3 + $0x190] sm:$0xff]  ;;  %v2020_v62 = vld [vmem:[#allocation3 + $0x198] sm:$0xff]  ;;  %v2026_v33 = vld [vmem:[#allocation3 + $0x1a0] sm:$0xff] }
  0x6c   :  { %3285 = vst [vmem:[#allocation29_spill] sm:$0xff] %v2026_v33  ;;  %v2028_v58 = vld [vmem:[#allocation3 + $0x1a8] sm:$0xff]  ;;  %v2034_v32 = vld [vmem:[#allocation3 + $0x1b0] sm:$0xff]  ;;  %v2036_v56 = vld [vmem:[#allocation3 + $0x1b8] sm:$0xff] }
  0x6d   :  { %3286 = vst [vmem:[#allocation30_spill] sm:$0xff] %v2028_v58  ;;  %3287 = vst [vmem:[#allocation31_spill] sm:$0xff] %v2034_v32  ;;  %v2042_v39 = vld [vmem:[#allocation3 + $0x1c0] sm:$0xff]  ;;  %v2044_v19 = vld [vmem:[#allocation3 + $0x1c8] sm:$0xff] }
  0x6e   :  { %3288 = vst [vmem:[#allocation32_spill] sm:$0xff] %v2036_v56  ;;  %v2050_v45 = vld [vmem:[#allocation3 + $0x1d0] sm:$0xff]  ;;  %v2052_v15 = vld [vmem:[#allocation3 + $0x1d8] sm:$0xff]  ;;  %v2058_v51 = vld [vmem:[#allocation3 + $0x1e0] sm:$0xff] }
  0x6f   :  { %3289 = vst [vmem:[#allocation33_spill] sm:$0xff] %v2058_v51  ;;  %v2060_v14 = vld [vmem:[#allocation3 + $0x1e8] sm:$0xff]  ;;  %v2066_v22 = vld [vmem:[#allocation3 + $0x1f0] sm:$0xff]  ;;  %v2068_v13 = vld [vmem:[#allocation3 + $0x1f8] sm:$0xff] }
  0x70   :  { %3290 = vst [vmem:[#allocation34_spill] sm:$0xff] %v2060_v14  ;;  %3291 = vst [vmem:[#allocation35_spill] sm:$0xff] %v2066_v22  ;;  %v2074_v61 = vld [vmem:[#allocation3 + $0x200] sm:$0xff]  ;;  %v2076_v12 = vld [vmem:[#allocation3 + $0x208] sm:$0xff] }
  0x71   :  { %3292 = vst [vmem:[#allocation36_spill] sm:$0xff] %v2068_v13  ;;  %3293 = vst [vmem:[#allocation37_spill] sm:$0xff] %v2074_v61  ;;  %v2082_v58 = vld [vmem:[#allocation3 + $0x210] sm:$0xff]  ;;  %v2084_v8 = vld [vmem:[#allocation3 + $0x218] sm:$0xff] }
  0x72   :  { %3294 = vst [vmem:[#allocation38_spill] sm:$0xff] %v2076_v12  ;;  %3295 = vst [vmem:[#allocation39_spill] sm:$0xff] %v2082_v58  ;;  %v2090_v44 = vld [vmem:[#allocation3 + $0x220] sm:$0xff]  ;;  %v2092_v7 = vld [vmem:[#allocation3 + $0x228] sm:$0xff] }
  0x73   :  { %3296 = vst [vmem:[#allocation40_spill] sm:$0xff] %v2084_v8  ;;  %3297 = vst [vmem:[#allocation41_spill] sm:$0xff] %v2090_v44  ;;  %v2098_v49 = vld [vmem:[#allocation3 + $0x230] sm:$0xff]  ;;  %v2100_v6 = vld [vmem:[#allocation3 + $0x238] sm:$0xff] }
  0x74   :  { %3298 = vst [vmem:[#allocation42_spill] sm:$0xff] %v2092_v7  ;;  %3299 = vst [vmem:[#allocation43_spill] sm:$0xff] %v2098_v49  ;;  %v2106_v26 = vld [vmem:[#allocation3 + $0x240] sm:$0xff]  ;;  %v2108_v38 = vld [vmem:[#allocation3 + $0x248] sm:$0xff] }
  0x75   :  { %3300 = vst [vmem:[#allocation44_spill] sm:$0xff] %v2100_v6  ;;  %3301 = vst [vmem:[#allocation45_spill] sm:$0xff] %v2106_v26  ;;  %v2114_v14 = vld [vmem:[#allocation3 + $0x250] sm:$0xff]  ;;  %v2116_v20 = vld [vmem:[#allocation3 + $0x258] sm:$0xff] }
  0x76   :  { %3302 = vst [vmem:[#allocation46_spill] sm:$0xff] %v2108_v38  ;;  %3303 = vst [vmem:[#allocation47_spill] sm:$0xff] %v2114_v14  ;;  %v2122_v13 = vld [vmem:[#allocation3 + $0x260] sm:$0xff]  ;;  %v2124_v57 = vld [vmem:[#allocation3 + $0x268] sm:$0xff] }
  0x77   :  { %3304 = vst [vmem:[#allocation48_spill] sm:$0xff] %v2116_v20  ;;  %3305 = vst [vmem:[#allocation49_spill] sm:$0xff] %v2122_v13  ;;  %v2130_v12 = vld [vmem:[#allocation3 + $0x270] sm:$0xff]  ;;  %v2132_v33 = vld [vmem:[#allocation3 + $0x278] sm:$0xff] }
  0x78   :  { %3306 = vst [vmem:[#allocation50_spill] sm:$0xff] %v2124_v57  ;;  %3307 = vst [vmem:[#allocation51_spill] sm:$0xff] %v2130_v12  ;;  %v2138_v8 = vld [vmem:[#allocation3 + $0x280] sm:$0xff]  ;;  %v2140_v32 = vld [vmem:[#allocation3 + $0x288] sm:$0xff] }
  0x79   :  { %3308 = vst [vmem:[#allocation52_spill] sm:$0xff] %v2132_v33  ;;  %3309 = vst [vmem:[#allocation53_spill] sm:$0xff] %v2138_v8  ;;  %v2146_v7 = vld [vmem:[#allocation3 + $0x290] sm:$0xff]  ;;  %v2148_v56 = vld [vmem:[#allocation3 + $0x298] sm:$0xff] }
  0x7a   :  { %3310 = vst [vmem:[#allocation54_spill] sm:$0xff] %v2140_v32  ;;  %3311 = vst [vmem:[#allocation55_spill] sm:$0xff] %v2146_v7  ;;  %v2154_v26 = vld [vmem:[#allocation3 + $0x2a0] sm:$0xff]  ;;  %v2156_v21 = vld [vmem:[#allocation3 + $0x2a8] sm:$0xff] }
  0x7b   :  { %3312 = vst [vmem:[#allocation56_spill] sm:$0xff] %v2148_v56  ;;  %3313 = vst [vmem:[#allocation57_spill] sm:$0xff] %v2154_v26  ;;  %v2162_v38 = vld [vmem:[#allocation3 + $0x2b0] sm:$0xff]  ;;  %v2164_v51 = vld [vmem:[#allocation3 + $0x2b8] sm:$0xff] }
  0x7c   :  { %3314 = vst [vmem:[#allocation58_spill] sm:$0xff] %v2156_v21  ;;  %3315 = vst [vmem:[#allocation59_spill] sm:$0xff] %v2162_v38  ;;  %v2170_v20 = vld [vmem:[#allocation3 + $0x2c0] sm:$0xff]  ;;  %v2172_v22 = vld [vmem:[#allocation3 + $0x2c8] sm:$0xff] }
  0x7d   :  { %3316 = vst [vmem:[#allocation60_spill] sm:$0xff] %v2164_v51  ;;  %3317 = vst [vmem:[#allocation61_spill] sm:$0xff] %v2170_v20  ;;  %v2178_v57 = vld [vmem:[#allocation3 + $0x2d0] sm:$0xff]  ;;  %v2180_v61 = vld [vmem:[#allocation3 + $0x2d8] sm:$0xff] }
  0x7e   :  { %3318 = vst [vmem:[#allocation62_spill] sm:$0xff] %v2172_v22  ;;  %3319 = vst [vmem:[#allocation63_spill] sm:$0xff] %v2178_v57  ;;  %v2186_v8 = vld [vmem:[#allocation3 + $0x2e0] sm:$0xff]  ;;  %v2188_v58 = vld [vmem:[#allocation3 + $0x2e8] sm:$0xff] }
  0x7f   :  { %3320 = vst [vmem:[#allocation64_spill] sm:$0xff] %v2180_v61  ;;  %3321 = vst [vmem:[#allocation65_spill] sm:$0xff] %v2186_v8  ;;  %v2194_v32 = vld [vmem:[#allocation3 + $0x2f0] sm:$0xff]  ;;  %v2196_v44 = vld [vmem:[#allocation3 + $0x2f8] sm:$0xff] }
  0x80   :  { %3322 = vst [vmem:[#allocation66_spill] sm:$0xff] %v2188_v58  ;;  %3323 = vst [vmem:[#allocation67_spill] sm:$0xff] %v2194_v32  ;;  %v2202_v56 = vld [vmem:[#allocation3 + $0x300] sm:$0xff]  ;;  %v2204_v49 = vld [vmem:[#allocation3 + $0x308] sm:$0xff] }
  0x81   :  { %3324 = vst [vmem:[#allocation68_spill] sm:$0xff] %v2196_v44  ;;  %3325 = vst [vmem:[#allocation69_spill] sm:$0xff] %v2202_v56  ;;  %v2210_v21 = vld [vmem:[#allocation3 + $0x310] sm:$0xff]  ;;  %v2212_v6 = vld [vmem:[#allocation3 + $0x318] sm:$0xff] }
  0x82   :  { %3326 = vst [vmem:[#allocation70_spill] sm:$0xff] %v2204_v49  ;;  %3327 = vst [vmem:[#allocation71_spill] sm:$0xff] %v2210_v21  ;;  %v2218_v20 = vld [vmem:[#allocation3 + $0x320] sm:$0xff]  ;;  %v2220_v14 = vld [vmem:[#allocation3 + $0x328] sm:$0xff] }
  0x83   :  { %3328 = vst [vmem:[#allocation72_spill] sm:$0xff] %v2212_v6  ;;  %3329 = vst [vmem:[#allocation73_spill] sm:$0xff] %v2218_v20  ;;  %v2226_v22 = vld [vmem:[#allocation3 + $0x330] sm:$0xff]  ;;  %v2228_v13 = vld [vmem:[#allocation3 + $0x338] sm:$0xff] }
  0x84   :  { %3330 = vst [vmem:[#allocation74_spill] sm:$0xff] %v2220_v14  ;;  %3331 = vst [vmem:[#allocation75_spill] sm:$0xff] %v2226_v22  ;;  %v2234_v61 = vld [vmem:[#allocation3 + $0x340] sm:$0xff]  ;;  %v2236_v12 = vld [vmem:[#allocation3 + $0x348] sm:$0xff]  ;;  %v3359_v22 = vunpack.c.h.bf16 %v1856_v16 }
  0x85   :  { %3332 = vst [vmem:[#allocation76_spill] sm:$0xff] %v2228_v13  ;;  %3333 = vst [vmem:[#allocation77_spill] sm:$0xff] %v2234_v61  ;;  %v2242_v58 = vld [vmem:[#allocation3 + $0x350] sm:$0xff]  ;;  %v2244_v33 = vld [vmem:[#allocation3 + $0x358] sm:$0xff] }
  0x86   :  { %3334 = vst [vmem:[#allocation78_spill] sm:$0xff] %v2236_v12  ;;  %3335 = vst [vmem:[#allocation79_spill] sm:$0xff] %v2242_v58  ;;  %v2250_v56 = vld [vmem:[#allocation3 + $0x360] sm:$0xff]  ;;  %v2252_v7 = vld [vmem:[#allocation3 + $0x368] sm:$0xff]  ;;  %v3352_v58 = vunpack.c.l.bf16 %v1831_v0 }
  0x87   :  { %3336 = vst [vmem:[#allocation80_spill] sm:$0xff] %v2244_v33  ;;  %3337 = vst [vmem:[#allocation81_spill] sm:$0xff] %v2250_v56  ;;  %v2258_v49 = vld [vmem:[#allocation3 + $0x370] sm:$0xff]  ;;  %v2260_v26 = vld [vmem:[#allocation3 + $0x378] sm:$0xff]  ;;  %v3357_v56 = vunpack.c.l.bf16 %v1856_v16  ;;  %v3367_v16 = vunpack.c.h.bf16 %v1860_v18 }
  0x88   :  { %3338 = vst [vmem:[#allocation82_spill] sm:$0xff] %v2252_v7  ;;  %3339 = vst [vmem:[#allocation83_spill] sm:$0xff] %v2258_v49  ;;  %v2266_v6 = vld [vmem:[#allocation3 + $0x380] sm:$0xff]  ;;  %v2268_v38 = vld [vmem:[#allocation3 + $0x388] sm:$0xff] }
  0x89   :  { %3340 = vst [vmem:[#allocation84_spill] sm:$0xff] %v2260_v26  ;;  %3341 = vst [vmem:[#allocation85_spill] sm:$0xff] %v2266_v6  ;;  %v2274_v14 = vld [vmem:[#allocation3 + $0x390] sm:$0xff]  ;;  %v2276_v51 = vld [vmem:[#allocation3 + $0x398] sm:$0xff]  ;;  %v3356_v26 = vunpack.c.l.bf16 %v1833_v1 }
  0x8a   :  { %3342 = vst [vmem:[#allocation86_spill] sm:$0xff] %v2268_v38  ;;  %3343 = vst [vmem:[#allocation87_spill] sm:$0xff] %v2274_v14  ;;  %v2282_v61 = vld [vmem:[#allocation3 + $0x3a0] sm:$0xff]  ;;  %v2284_v57 = vld [vmem:[#allocation3 + $0x3a8] sm:$0xff]  ;;  %v3353_v14 = vunpack.c.l.bf16 %v1850_v11 }
  0x8b   :  { %3344 = vst [vmem:[#allocation88_spill] sm:$0xff] %v2282_v61  ;;  %3345 = vst [vmem:[#allocation89_spill] sm:$0xff] %v2284_v57  ;;  %v2290_v12 = vld [vmem:[#allocation3 + $0x3b0] sm:$0xff]  ;;  %v2292_v8 = vld [vmem:[#allocation3 + $0x3b8] sm:$0xff]  ;;  %v3355_v57 = vunpack.c.h.bf16 %v1850_v11  ;;  %v3358_v61 = vunpack.c.h.bf16 %v1833_v1  ;;  %v3363_v11 = vunpack.c.h.bf16 %v1858_v17  ;;  %v3366_v1 = vunpack.c.h.bf16 %v1837_v3 }
  0x8c   :  { %3346 = vst [vmem:[#allocation90_spill] sm:$0xff] %v2290_v12  ;;  %3347 = vst [vmem:[#allocation91_spill] sm:$0xff] %v2292_v8  ;;  %v2298_v33 = vld [vmem:[#allocation3 + $0x3c0] sm:$0xff]  ;;  %v2300_v32 = vld [vmem:[#allocation3 + $0x3c8] sm:$0xff]  ;;  %v477_v8 = vadd.f32 %v3353_v14, %v3352_v58  ;;  %v3354_v12 = vunpack.c.h.bf16 %v1831_v0  ;;  %v3362_v0 = vunpack.c.h.bf16 %v1835_v2  ;;  %v3365_v58 = vunpack.c.l.bf16 %v1860_v18 }
  0x8d   :  { %v2306_v7 = vld [vmem:[#allocation3 + $0x3d0] sm:$0xff]  ;;  %v2308_v44 = vld [vmem:[#allocation3 + $0x3d8] sm:$0xff]  ;;  %v2314_v6 = vld [vmem:[#allocation3 + $0x3e0] sm:$0xff]  ;;  %v516_v49 = vadd.f32 %v3359_v22, %v3358_v61  ;;  %v568_v22 = vadd.f32 %v3367_v16, %v3366_v1  ;;  %v3374_v18 = vunpack.c.l.bf16 %v1892_v42 }
  0x8e   :  { %3348 = vst [vmem:[#allocation92_spill] sm:$0xff] %v2308_v44  ;;  %3349 = vst [vmem:[#allocation93_spill] sm:$0xff] %v2314_v6  ;;  %v2316_v21 = vld [vmem:[#allocation3 + $0x3e8] sm:$0xff]  ;;  %v2322_v38 = vld [vmem:[#allocation3 + $0x3f0] sm:$0xff]  ;;  %v490_v13 = vadd.f32 %v3355_v57, %v3354_v12  ;;  %v3361_v6 = vunpack.c.l.bf16 %v1858_v17  ;;  %v542_v12 = vadd.f32 %v3363_v11, %v3362_v0  ;;  %v3364_v57 = vunpack.c.l.bf16 %v1837_v3 }
  0x8f   :  { %3350 = vst [vmem:[#allocation94_spill] sm:$0xff] %v2316_v21  ;;  %3351 = vst [vmem:[#allocation95_spill] sm:$0xff] %v2322_v38  ;;  %v2324_v20 = vld [vmem:[#allocation3 + $0x3f8] sm:$0xff]  ;;  %v503_v21 = vadd.f32 %v3357_v56, %v3356_v26  ;;  %v3360_v38 = vunpack.c.l.bf16 %v1835_v2  ;;  %v3368_v56 = vunpack.c.l.bf16 %v1882_v35  ;;  %v3370_v2 = vunpack.c.l.bf16 %v1884_v36 }
  0x90   :  { %v555_v26 = vadd.f32 %v3365_v58, %v3364_v57  ;;  %v3371_v0 = vunpack.c.h.bf16 %v1884_v36  ;;  %v3372_v44 = vunpack.c.l.bf16 %v1890_v41  ;;  %v3373_v3 = vunpack.c.h.bf16 %v1890_v41 }
  0x91   :  { %v529_v14 = vadd.f32 %v3361_v6, %v3360_v38  ;;  %v478_v61 = vadd.f32 %v477_v8, %v3368_v56  ;;  %v3369_v6 = vunpack.c.h.bf16 %v1882_v35  ;;  %v504_v17 = vadd.f32 %v503_v21, %v3370_v2 }
  0x92   :  { %v517_v11 = vadd.f32 %v516_v49, %v3371_v0  ;;  %v543_v58 = vadd.f32 %v542_v12, %v3373_v3  ;;  %v556_v1 = vadd.f32 %v555_v26, %v3374_v18  ;;  %v3375_v8 = vunpack.c.h.bf16 %v1892_v42 }
  0x93   :  { %v491_v38 = vadd.f32 %v490_v13, %v3369_v6  ;;  %v530_v57 = vadd.f32 %v529_v14, %v3372_v44  ;;  %v3376_v13 = vunpack.c.l.bf16 %v1914_v59  ;;  %v3377_v21 = vunpack.c.h.bf16 %v1914_v59 }
  0x94   :  { %v569_v16 = vadd.f32 %v568_v22, %v3375_v8  ;;  %v3378_v36 = vunpack.c.l.bf16 %v1916_v60  ;;  %v3379_v44 = vunpack.c.h.bf16 %v1916_v60  ;;  %v3380_v41 = vunpack.c.l.bf16 %v1922_v52 }
  0x95   :  { %v479_v35 = vadd.f32 %v478_v61, %v3376_v13  ;;  %v492_v56 = vadd.f32 %v491_v38, %v3377_v21  ;;  %v3381_v26 = vunpack.c.h.bf16 %v1922_v52  ;;  %v3382_v42 = vunpack.c.l.bf16 %v1924_v55 }
  0x96   :  { %v505_v49 = vadd.f32 %v504_v17, %v3378_v36  ;;  %v518_v14 = vadd.f32 %v517_v11, %v3379_v44  ;;  %v531_v12 = vadd.f32 %v530_v57, %v3380_v41  ;;  %v3383_v61 = vunpack.c.h.bf16 %v1924_v55 }
  0x97   :  { %v544_v6 = vadd.f32 %v543_v58, %v3381_v26  ;;  %v557_v22 = vadd.f32 %v556_v1, %v3382_v42  ;;  %v3384_v59 = vunpack.c.l.bf16 %v1946_v28  ;;  %v3385_v17 = vunpack.c.h.bf16 %v1946_v28 }
  0x98   :  { %v570_v2 = vadd.f32 %v569_v16, %v3383_v61  ;;  %v3386_v60 = vunpack.c.l.bf16 %v1948_v25  ;;  %v3387_v57 = vunpack.c.h.bf16 %v1948_v25  ;;  %v3388_v52 = vunpack.c.l.bf16 %v1954_v63 }
  0x99   :  { %v480_v38 = vadd.f32 %v479_v35, %v3384_v59  ;;  %v493_v0 = vadd.f32 %v492_v56, %v3385_v17  ;;  %v3389_v18 = vunpack.c.h.bf16 %v1954_v63  ;;  %v3390_v55 = vunpack.c.l.bf16 %v1956_v27 }
  0x9a   :  { %v506_v11 = vadd.f32 %v505_v49, %v3386_v60  ;;  %v519_v3 = vadd.f32 %v518_v14, %v3387_v57  ;;  %v532_v58 = vadd.f32 %v531_v12, %v3388_v52  ;;  %v3391_v16 = vunpack.c.h.bf16 %v1956_v27 }
  0x9b   :  { %v545_v1 = vadd.f32 %v544_v6, %v3389_v18  ;;  %v558_v8 = vadd.f32 %v557_v22, %v3390_v55  ;;  %v3392_v28 = vunpack.c.l.bf16 %v1978_v43  ;;  %v3393_v21 = vunpack.c.h.bf16 %v1978_v43 }
  0x9c   :  { %v571_v13 = vadd.f32 %v570_v2, %v3391_v16  ;;  %v3394_v25 = vunpack.c.l.bf16 %v1980_v46  ;;  %v3395_v49 = vunpack.c.h.bf16 %v1980_v46  ;;  %v3396_v63 = vunpack.c.l.bf16 %v1986_v40 }
  0x9d   :  { %v481_v35 = vadd.f32 %v480_v38, %v3392_v28  ;;  %v494_v56 = vadd.f32 %v493_v0, %v3393_v21  ;;  %v3397_v41 = vunpack.c.h.bf16 %v1986_v40  ;;  %v3398_v27 = vunpack.c.l.bf16 %v1988_v50 }
  0x9e   :  { %v507_v36 = vadd.f32 %v506_v11, %v3394_v25  ;;  %v520_v44 = vadd.f32 %v519_v3, %v3395_v49  ;;  %v533_v14 = vadd.f32 %v532_v58, %v3396_v63  ;;  %v3399_v6 = vunpack.c.h.bf16 %v1988_v50 }
  0x9f   :  { %v546_v12 = vadd.f32 %v545_v1, %v3397_v41  ;;  %v559_v26 = vadd.f32 %v558_v8, %v3398_v27  ;;  %v3400_v43 = vunpack.c.l.bf16 %v2010_v37  ;;  %v3401_v61 = vunpack.c.h.bf16 %v2010_v37 }
  0xa0   :  { %v572_v42 = vadd.f32 %v571_v13, %v3399_v6  ;;  %v3402_v46 = vunpack.c.l.bf16 %v2012_v31  ;;  %v3403_v38 = vunpack.c.h.bf16 %v2012_v31  ;;  %v3404_v40 = vunpack.c.l.bf16 %v2018_v34 }
  0xa1   :  { %v482_v22 = vadd.f32 %v481_v35, %v3400_v43  ;;  %v495_v2 = vadd.f32 %v494_v56, %v3401_v61  ;;  %v3405_v60 = vunpack.c.h.bf16 %v2018_v34  ;;  %v3406_v50 = vunpack.c.l.bf16 %v2020_v62 }
  0xa2   :  { %v508_v59 = vadd.f32 %v507_v36, %v3402_v46  ;;  %v521_v17 = vadd.f32 %v520_v44, %v3403_v38  ;;  %v534_v0 = vadd.f32 %v533_v14, %v3404_v40  ;;  %v3407_v3 = vunpack.c.h.bf16 %v2020_v62 }
  0xa3   :  { %v547_v11 = vadd.f32 %v546_v12, %v3405_v60  ;;  %v560_v57 = vadd.f32 %v559_v26, %v3406_v50  ;;  %v3408_v37 = vunpack.c.l.bf16 %v2042_v39  ;;  %v3409_v18 = vunpack.c.h.bf16 %v2042_v39 }
  0xa4   :  { %v573_v52 = vadd.f32 %v572_v42, %v3407_v3  ;;  %v3410_v31 = vunpack.c.l.bf16 %v2044_v19  ;;  %v3411_v8 = vunpack.c.h.bf16 %v2044_v19  ;;  %v3412_v34 = vunpack.c.l.bf16 %v2050_v45 }
  0xa5   :  { %v483_v58 = vadd.f32 %v482_v22, %v3408_v37  ;;  %v496_v1 = vadd.f32 %v495_v2, %v3409_v18  ;;  %v3413_v28 = vunpack.c.h.bf16 %v2050_v45  ;;  %v3414_v62 = vunpack.c.l.bf16 %v2052_v15 }
  0xa6   :  { %v509_v55 = vadd.f32 %v508_v59, %v3410_v31  ;;  %v522_v16 = vadd.f32 %v521_v17, %v3411_v8  ;;  %v535_v13 = vadd.f32 %v534_v0, %v3412_v34  ;;  %v3415_v56 = vunpack.c.h.bf16 %v2052_v15 }
  0xa7   :  { %v548_v35 = vadd.f32 %v547_v11, %v3413_v28  ;;  %v561_v21 = vadd.f32 %v560_v57, %v3414_v62  ;;  %v484_v39 = vrot.slane %v483_v58, 4  ;;  %v497_v36 = vrot.slane %v496_v1, 4 }
  0xa8   :  { %v574_v25 = vadd.f32 %v573_v52, %v3415_v56  ;;  %v510_v49 = vrot.slane %v509_v55, 4  ;;  %v523_v44 = vrot.slane %v522_v16, 4  ;;  %v536_v63 = vrot.slane %v535_v13, 4 }
  0xa9   :  { %v549_v14 = vrot.slane %v548_v35, 4  ;;  %v562_v19 = vrot.slane %v561_v21, 4  ;;  %v485_v12 = vadd.f32 %v484_v39, %v483_v58  ;;  %v498_v27 = vadd.f32 %v497_v36, %v496_v1 }
  0xaa   :  { %v575_v41 = vrot.slane %v574_v25, 4  ;;  %v511_v26 = vadd.f32 %v510_v49, %v509_v55  ;;  %v524_v6 = vadd.f32 %v523_v44, %v522_v16  ;;  %v537_v45 = vadd.f32 %v536_v63, %v535_v13 }
  0xab   :  { %v550_v42 = vadd.f32 %v549_v14, %v548_v35  ;;  %v563_v43 = vadd.f32 %v562_v19, %v561_v21  ;;  %v486_v61 = vrot.slane %v485_v12, 2  ;;  %v499_v2 = vrot.slane %v498_v27, 2 }
  0xac   :  { %v576_v22 = vadd.f32 %v575_v41, %v574_v25  ;;  %v512_v15 = vrot.slane %v511_v26, 2  ;;  %v525_v46 = vrot.slane %v524_v6, 2  ;;  %v538_v59 = vrot.slane %v537_v45, 2 }
  0xad   :  { %v551_v38 = vrot.slane %v550_v42, 2  ;;  %v564_v17 = vrot.slane %v563_v43, 2  ;;  %v487_v0 = vadd.f32 %v486_v61, %v485_v12  ;;  %v500_v60 = vadd.f32 %v499_v2, %v498_v27 }
  0xae   :  { %v577_v40 = vrot.slane %v576_v22, 2  ;;  %v513_v11 = vadd.f32 %v512_v15, %v511_v26  ;;  %v526_v50 = vadd.f32 %v525_v46, %v524_v6  ;;  %v539_v57 = vadd.f32 %v538_v59, %v537_v45 }
  0xaf   :  { %v552_v3 = vadd.f32 %v551_v38, %v550_v42  ;;  %v565_v52 = vadd.f32 %v564_v17, %v563_v43  ;;  %v488_v58 = vrot.slane %v487_v0, 1  ;;  %v501_v18 = vrot.slane %v500_v60, 1 }
  0xb0   :  { %v2470_v37 = vadd.f32 %v577_v40, %v576_v22  ;;  %v514_v1 = vrot.slane %v513_v11, 1  ;;  %v527_v31 = vrot.slane %v526_v50, 1  ;;  %v476_v55 = vunpack.c.h.bf16 %v2324_v20 }
  0xb1   :  { %v540_v8 = vrot.slane %v539_v57, 1  ;;  %v553_v16 = vrot.slane %v552_v3, 1  ;;  %v566_v34 = vrot.slane %v565_v52, 1  ;;  %v2473_v13 = vadd.f32 %v488_v58, %v487_v0 }
  0xb2   :  { %v2475_v28 = vadd.f32 %v501_v18, %v500_v60  ;;  %v2477_v35 = vadd.f32 %v514_v1, %v513_v11  ;;  %v579_v62 = vrot.slane %v2470_v37, 1  ;;  %v2480_v21 = vadd.f32 %v527_v31, %v526_v50 }
  0xb3   :  { %v2482_v56 = vadd.f32 %v540_v8, %v539_v57  ;;  %v2484_v25 = vadd.f32 %v553_v16, %v552_v3  ;;  %v2486_v39 = vadd.f32 %v566_v34, %v565_v52  ;;  %v3416_v36 = vunpack.c.l.bf16 %v1839_v4 }
  0xb4   :  { %v3417_v49 = vunpack.c.l.bf16 %v1866_v23  ;;  %v3418_v63 = vunpack.c.h.bf16 %v1839_v4  ;;  %v3419_v14 = vunpack.c.h.bf16 %v1866_v23  ;;  %v3420_v41 = vunpack.c.l.bf16 %v1841_v5 }
  0xb5   :  { %v3421_v12 = vunpack.c.l.bf16 %v1868_v24  ;;  %v3422_v26 = vunpack.c.h.bf16 %v1841_v5  ;;  %v3423_v6 = vunpack.c.h.bf16 %v1868_v24  ;;  %v3424_v42 = vunpack.c.l.bf16 %v1846_v9 }
  0xb6   :  { %v581_v44 = vadd.f32 %v3417_v49, %v3416_v36  ;;  %v594_v19 = vadd.f32 %v3419_v14, %v3418_v63  ;;  %v3425_v43 = vunpack.c.l.bf16 %v1874_v29  ;;  %v3426_v4 = vunpack.c.h.bf16 %v1846_v9 }
  0xb7   :  { %v607_v27 = vadd.f32 %v3421_v12, %v3420_v41  ;;  %v620_v45 = vadd.f32 %v3423_v6, %v3422_v26  ;;  %v3427_v23 = vunpack.c.h.bf16 %v1874_v29  ;;  %v3428_v2 = vunpack.c.l.bf16 %v1848_v10 }
  0xb8   :  { %v633_v22 = vadd.f32 %v3425_v43, %v3424_v42  ;;  %v3429_v15 = vunpack.c.l.bf16 %v1876_v30  ;;  %v3430_v5 = vunpack.c.h.bf16 %v1848_v10  ;;  %v3431_v24 = vunpack.c.h.bf16 %v1876_v30 }
  0xb9   :  { %v646_v61 = vadd.f32 %v3427_v23, %v3426_v4  ;;  %v3432_v38 = vunpack.c.l.bf16 %v1898_v47  ;;  %v3433_v40 = vunpack.c.h.bf16 %v1898_v47  ;;  %v3434_v9 = vunpack.c.l.bf16 %v1900_v48  ;;  %v3440_v47 = vld [vmem:[#allocation17_spill] sm:$0xff]  ;;  %v3455_v23 = vld [vmem:[#allocation22_spill] sm:$0xff] }
  0xba   :  { %v659_v46 = vadd.f32 %v3429_v15, %v3428_v2  ;;  %v672_v59 = vadd.f32 %v3431_v24, %v3430_v5  ;;  %v3435_v60 = vunpack.c.h.bf16 %v1900_v48  ;;  %v3436_v50 = vunpack.c.l.bf16 %v1906_v53  ;;  %v3443_v48 = vld [vmem:[#allocation18_spill] sm:$0xff]  ;;  %v3458_v5 = vld [vmem:[#allocation23_spill] sm:$0xff] }
  0xbb   :  { %v582_v17 = vadd.f32 %v581_v44, %v3432_v38  ;;  %v595_v0 = vadd.f32 %v594_v19, %v3433_v40  ;;  %v608_v29 = vadd.f32 %v607_v27, %v3434_v9  ;;  %v3437_v10 = vunpack.c.h.bf16 %v1906_v53  ;;  %v3446_v53 = vld [vmem:[#allocation19_spill] sm:$0xff]  ;;  %v3461_v40 = vld [vmem:[#allocation24_spill] sm:$0xff] }
  0xbc   :  { %v621_v11 = vadd.f32 %v620_v45, %v3435_v60  ;;  %v634_v57 = vadd.f32 %v633_v22, %v3436_v50  ;;  %v3438_v30 = vunpack.c.l.bf16 %v1908_v54  ;;  %v3439_v58 = vunpack.c.h.bf16 %v1908_v54  ;;  %v3449_v54 = vld [vmem:[#allocation20_spill] sm:$0xff]  ;;  %v3452_v45 = vld [vmem:[#allocation21_spill] sm:$0xff] }
  0xbd   :  { %v647_v3 = vadd.f32 %v646_v61, %v3437_v10  ;;  %v3441_v1 = vunpack.c.l.bf16 %v3440_v47  ;;  %v3442_v8 = vunpack.c.h.bf16 %v3440_v47  ;;  %v3444_v34 = vunpack.c.l.bf16 %v3443_v48 }
  0xbe   :  { %v660_v52 = vadd.f32 %v659_v46, %v3438_v30  ;;  %v673_v18 = vadd.f32 %v672_v59, %v3439_v58  ;;  %v3445_v49 = vunpack.c.h.bf16 %v3443_v48  ;;  %v3447_v63 = vunpack.c.l.bf16 %v3446_v53  ;;  %v3467_v30 = vld [vmem:[#allocation26_spill] sm:$0xff] }
  0xbf   :  { %v583_v31 = vadd.f32 %v582_v17, %v3441_v1  ;;  %v596_v16 = vadd.f32 %v595_v0, %v3442_v8  ;;  %v609_v36 = vadd.f32 %v608_v29, %v3444_v34  ;;  %v3448_v19 = vunpack.c.h.bf16 %v3446_v53  ;;  %v3470_v1 = vld [vmem:[#allocation27_spill] sm:$0xff]  ;;  %v3473_v34 = vld [vmem:[#allocation28_spill] sm:$0xff] }
  0xc0   :  { %v622_v44 = vadd.f32 %v621_v11, %v3445_v49  ;;  %v635_v14 = vadd.f32 %v634_v57, %v3447_v63  ;;  %v3450_v12 = vunpack.c.l.bf16 %v3449_v54  ;;  %v3451_v26 = vunpack.c.h.bf16 %v3449_v54  ;;  %v3464_v11 = vld [vmem:[#allocation25_spill] sm:$0xff] }
  0xc1   :  { %v648_v41 = vadd.f32 %v647_v3, %v3448_v19  ;;  %v3453_v42 = vunpack.c.l.bf16 %v3452_v45  ;;  %v3454_v22 = vunpack.c.h.bf16 %v3452_v45  ;;  %v3456_v61 = vunpack.c.l.bf16 %v3455_v23  ;;  %v3476_v63 = vld [vmem:[#allocation29_spill] sm:$0xff] }
  0xc2   :  { %v661_v27 = vadd.f32 %v660_v52, %v3450_v12  ;;  %v674_v6 = vadd.f32 %v673_v18, %v3451_v26  ;;  %v3457_v15 = vunpack.c.h.bf16 %v3455_v23  ;;  %v3459_v24 = vunpack.c.l.bf16 %v3458_v5  ;;  %v3479_v12 = vld [vmem:[#allocation30_spill] sm:$0xff] }
  0xc3   :  { %v584_v43 = vadd.f32 %v583_v31, %v3453_v42  ;;  %v597_v4 = vadd.f32 %v596_v16, %v3454_v22  ;;  %v610_v2 = vadd.f32 %v609_v36, %v3456_v61  ;;  %v3460_v38 = vunpack.c.h.bf16 %v3458_v5  ;;  %v3482_v42 = vld [vmem:[#allocation31_spill] sm:$0xff]  ;;  %v3485_v61 = vld [vmem:[#allocation32_spill] sm:$0xff] }
  0xc4   :  { %v623_v46 = vadd.f32 %v622_v44, %v3457_v15  ;;  %v636_v59 = vadd.f32 %v635_v14, %v3459_v24  ;;  %v3462_v0 = vunpack.c.l.bf16 %v3461_v40  ;;  %v3463_v29 = vunpack.c.h.bf16 %v3461_v40  ;;  %v3488_v24 = vld [vmem:[#allocation33_spill] sm:$0xff] }
  0xc5   :  { %v649_v17 = vadd.f32 %v648_v41, %v3460_v38  ;;  %v3465_v50 = vunpack.c.l.bf16 %v3464_v11  ;;  %v3466_v10 = vunpack.c.h.bf16 %v3464_v11  ;;  %v3468_v52 = vunpack.c.l.bf16 %v3467_v30 }
  0xc6   :  { %v662_v9 = vadd.f32 %v661_v27, %v3462_v0  ;;  %v675_v60 = vadd.f32 %v674_v6, %v3463_v29  ;;  %v3469_v18 = vunpack.c.h.bf16 %v3467_v30  ;;  %v3471_v31 = vunpack.c.l.bf16 %v3470_v1  ;;  %v3491_v0 = vld [vmem:[#allocation34_spill] sm:$0xff] }
  0xc7   :  { %v585_v57 = vadd.f32 %v584_v43, %v3465_v50  ;;  %v598_v3 = vadd.f32 %v597_v4, %v3466_v10  ;;  %v611_v58 = vadd.f32 %v610_v2, %v3468_v52  ;;  %v3472_v16 = vunpack.c.h.bf16 %v3470_v1  ;;  %v3494_v50 = vld [vmem:[#allocation35_spill] sm:$0xff]  ;;  %v3497_v52 = vld [vmem:[#allocation36_spill] sm:$0xff] }
  0xc8   :  { %v624_v47 = vadd.f32 %v623_v46, %v3469_v18  ;;  %v637_v8 = vadd.f32 %v636_v59, %v3471_v31  ;;  %v3474_v36 = vunpack.c.l.bf16 %v3473_v34  ;;  %v3475_v44 = vunpack.c.h.bf16 %v3473_v34 }
  0xc9   :  { %v650_v48 = vadd.f32 %v649_v17, %v3472_v16  ;;  %v3477_v14 = vunpack.c.l.bf16 %v3476_v63  ;;  %v3478_v41 = vunpack.c.h.bf16 %v3476_v63  ;;  %v3480_v27 = vunpack.c.l.bf16 %v3479_v12 }
  0xca   :  { %v663_v49 = vadd.f32 %v662_v9, %v3474_v36  ;;  %v676_v53 = vadd.f32 %v675_v60, %v3475_v44  ;;  %v3481_v6 = vunpack.c.h.bf16 %v3479_v12  ;;  %v3483_v43 = vunpack.c.l.bf16 %v3482_v42 }
  0xcb   :  { %v586_v19 = vadd.f32 %v585_v57, %v3477_v14  ;;  %v599_v54 = vadd.f32 %v598_v3, %v3478_v41  ;;  %v612_v26 = vadd.f32 %v611_v58, %v3480_v27  ;;  %v3484_v4 = vunpack.c.h.bf16 %v3482_v42 }
  0xcc   :  { %v625_v45 = vadd.f32 %v624_v47, %v3481_v6  ;;  %v638_v22 = vadd.f32 %v637_v8, %v3483_v43  ;;  %v3486_v2 = vunpack.c.l.bf16 %v3485_v61  ;;  %v3487_v46 = vunpack.c.h.bf16 %v3485_v61 }
  0xcd   :  { %v651_v23 = vadd.f32 %v650_v48, %v3484_v4  ;;  %v3489_v59 = vunpack.c.l.bf16 %v3488_v24  ;;  %v3490_v17 = vunpack.c.h.bf16 %v3488_v24  ;;  %v3492_v9 = vunpack.c.l.bf16 %v3491_v0 }
  0xce   :  { %v664_v15 = vadd.f32 %v663_v49, %v3486_v2  ;;  %v677_v5 = vadd.f32 %v676_v53, %v3487_v46  ;;  %v3493_v60 = vunpack.c.h.bf16 %v3491_v0  ;;  %v3495_v57 = vunpack.c.l.bf16 %v3494_v50 }
  0xcf   :  { %v587_v38 = vadd.f32 %v586_v19, %v3489_v59  ;;  %v600_v40 = vadd.f32 %v599_v54, %v3490_v17  ;;  %v613_v29 = vadd.f32 %v612_v26, %v3492_v9  ;;  %v3496_v3 = vunpack.c.h.bf16 %v3494_v50 }
  0xd0   :  { %v626_v11 = vadd.f32 %v625_v45, %v3493_v60  ;;  %v639_v10 = vadd.f32 %v638_v22, %v3495_v57  ;;  %v3498_v58 = vunpack.c.l.bf16 %v3497_v52  ;;  %v3499_v47 = vunpack.c.h.bf16 %v3497_v52 }
  0xd1   :  { %v652_v30 = vadd.f32 %v651_v23, %v3496_v3  ;;  %v588_v31 = vrot.slane %v587_v38, 4  ;;  %v601_v8 = vrot.slane %v600_v40, 4  ;;  %v614_v16 = vrot.slane %v613_v29, 4 }
  0xd2   :  { %v665_v18 = vadd.f32 %v664_v15, %v3498_v58  ;;  %v678_v1 = vadd.f32 %v677_v5, %v3499_v47  ;;  %v627_v48 = vrot.slane %v626_v11, 4  ;;  %v640_v34 = vrot.slane %v639_v10, 4 }
  0xd3   :  { %v653_v36 = vrot.slane %v652_v30, 4  ;;  %v589_v53 = vadd.f32 %v588_v31, %v587_v38  ;;  %v602_v63 = vadd.f32 %v601_v8, %v600_v40  ;;  %v615_v14 = vadd.f32 %v614_v16, %v613_v29 }
  0xd4   :  { %v666_v49 = vrot.slane %v665_v18, 4  ;;  %v679_v44 = vrot.slane %v678_v1, 4  ;;  %v628_v19 = vadd.f32 %v627_v48, %v626_v11  ;;  %v641_v41 = vadd.f32 %v640_v34, %v639_v10 }
  0xd5   :  { %v654_v54 = vadd.f32 %v653_v36, %v652_v30  ;;  %v590_v26 = vrot.slane %v589_v53, 2  ;;  %v603_v6 = vrot.slane %v602_v63, 2  ;;  %v616_v45 = vrot.slane %v615_v14, 2  ;;  %v3506_v36 = vld [vmem:[#allocation38_spill] sm:$0xff] }
  0xd6   :  { %v667_v12 = vadd.f32 %v666_v49, %v665_v18  ;;  %v680_v27 = vadd.f32 %v679_v44, %v678_v1  ;;  %v629_v42 = vrot.slane %v628_v19, 2  ;;  %v642_v43 = vrot.slane %v641_v41, 2  ;;  %v3502_v1 = vld [vmem:[#allocation45_spill] sm:$0xff]  ;;  %v3508_v44 = vld [vmem:[#allocation46_spill] sm:$0xff] }
  0xd7   :  { %v655_v22 = vrot.slane %v654_v54, 2  ;;  %v591_v61 = vadd.f32 %v590_v26, %v589_v53  ;;  %v604_v2 = vadd.f32 %v603_v6, %v602_v63  ;;  %v617_v15 = vadd.f32 %v616_v45, %v615_v14 }
  0xd8   :  { %v668_v4 = vrot.slane %v667_v12, 2  ;;  %v681_v23 = vrot.slane %v680_v27, 2  ;;  %v630_v46 = vadd.f32 %v629_v42, %v628_v19  ;;  %v643_v5 = vadd.f32 %v642_v43, %v641_v41 }
  0xd9   :  { %v656_v24 = vadd.f32 %v655_v22, %v654_v54  ;;  %v592_v17 = vrot.slane %v591_v61, 1  ;;  %v605_v40 = vrot.slane %v604_v2, 1  ;;  %v618_v0 = vrot.slane %v617_v15, 1  ;;  %v3512_v54 = vld [vmem:[#allocation39_spill] sm:$0xff]  ;;  %v3518_v22 = vld [vmem:[#allocation40_spill] sm:$0xff] }
  0xda   :  { %v669_v59 = vadd.f32 %v668_v4, %v667_v12  ;;  %v2616_v38 = vadd.f32 %v681_v23, %v680_v27  ;;  %v631_v9 = vrot.slane %v630_v46, 1  ;;  %v2621_v29 = vadd.f32 %v579_v62, %v2470_v37  ;;  %v3500_v37 = vld [vmem:[#allocation37_spill] sm:$0xff]  ;;  %v3514_v27 = vld [vmem:[#allocation47_spill] sm:$0xff]  ;;  %v3520_v23 = vld [vmem:[#allocation48_spill] sm:$0xff] }
  0xdb   :  { %v644_v60 = vrot.slane %v643_v5, 1  ;;  %v657_v11 = vrot.slane %v656_v24, 1  ;;  %v2623_v57 = vadd.f32 %v592_v17, %v591_v61  ;;  %v2625_v10 = vadd.f32 %v605_v40, %v604_v2 }
  0xdc   :  { %v670_v50 = vrot.slane %v669_v59, 1  ;;  %v2627_v3 = vadd.f32 %v618_v0, %v617_v15  ;;  %v683_v30 = vrot.slane %v2616_v38, 1  ;;  %v2630_v52 = vadd.f32 %v631_v9, %v630_v46  ;;  %v3527_v9 = vld [vmem:[#allocation54_spill] sm:$0xff] }
  0xdd   :  { %v2632_v58 = vadd.f32 %v644_v60, %v643_v5  ;;  %v2634_v18 = vadd.f32 %v657_v11, %v656_v24  ;;  %v3501_v62 = vunpack.c.l.bf16 %v3500_v37  ;;  %v3503_v31 = vunpack.c.l.bf16 %v3502_v1  ;;  %v3524_v24 = vld [vmem:[#allocation53_spill] sm:$0xff] }
  0xde   :  { %v2636_v47 = vadd.f32 %v670_v50, %v669_v59  ;;  %v3504_v16 = vunpack.c.h.bf16 %v3500_v37  ;;  %v3505_v48 = vunpack.c.h.bf16 %v3502_v1  ;;  %v3507_v49 = vunpack.c.l.bf16 %v3506_v36 }
  0xdf   :  { %v685_v8 = vadd.f32 %v3503_v31, %v3501_v62  ;;  %v3509_v53 = vunpack.c.l.bf16 %v3508_v44  ;;  %v3510_v14 = vunpack.c.h.bf16 %v3506_v36  ;;  %v3511_v19 = vunpack.c.h.bf16 %v3508_v44  ;;  %v3530_v62 = vld [vmem:[#allocation55_spill] sm:$0xff]  ;;  %v3533_v36 = vld [vmem:[#allocation56_spill] sm:$0xff] }
  0xe0   :  { %v698_v34 = vadd.f32 %v3505_v48, %v3504_v16  ;;  %v3513_v12 = vunpack.c.l.bf16 %v3512_v54  ;;  %v3515_v26 = vunpack.c.l.bf16 %v3514_v27  ;;  %v3516_v45 = vunpack.c.h.bf16 %v3512_v54 }
  0xe1   :  { %v711_v63 = vadd.f32 %v3509_v53, %v3507_v49  ;;  %v724_v41 = vadd.f32 %v3511_v19, %v3510_v14  ;;  %v3517_v42 = vunpack.c.h.bf16 %v3514_v27  ;;  %v3519_v4 = vunpack.c.l.bf16 %v3518_v22  ;;  %v3536_v14 = vld [vmem:[#allocation61_spill] sm:$0xff] }
  0xe2   :  { %v737_v6 = vadd.f32 %v3515_v26, %v3513_v12  ;;  %v3521_v61 = vunpack.c.l.bf16 %v3520_v23  ;;  %v3522_v15 = vunpack.c.h.bf16 %v3518_v22  ;;  %v3523_v46 = vunpack.c.h.bf16 %v3520_v23  ;;  %v3539_v12 = vld [vmem:[#allocation62_spill] sm:$0xff]  ;;  %v3545_v23 = vld [vmem:[#allocation64_spill] sm:$0xff] }
  0xe3   :  { %v750_v43 = vadd.f32 %v3517_v42, %v3516_v45  ;;  %v3525_v59 = vunpack.c.l.bf16 %v3524_v24  ;;  %v3526_v40 = vunpack.c.h.bf16 %v3524_v24  ;;  %v3528_v60 = vunpack.c.l.bf16 %v3527_v9  ;;  %v3542_v45 = vld [vmem:[#allocation63_spill] sm:$0xff] }
  0xe4   :  { %v763_v2 = vadd.f32 %v3521_v61, %v3519_v4  ;;  %v776_v5 = vadd.f32 %v3523_v46, %v3522_v15  ;;  %v3529_v50 = vunpack.c.h.bf16 %v3527_v9  ;;  %v3531_v1 = vunpack.c.l.bf16 %v3530_v62 }
  0xe5   :  { %v686_v17 = vadd.f32 %v685_v8, %v3525_v59  ;;  %v699_v0 = vadd.f32 %v698_v34, %v3526_v40  ;;  %v712_v11 = vadd.f32 %v711_v63, %v3528_v60  ;;  %v3532_v16 = vunpack.c.h.bf16 %v3530_v62 }
  0xe6   :  { %v725_v37 = vadd.f32 %v724_v41, %v3529_v50  ;;  %v738_v31 = vadd.f32 %v737_v6, %v3531_v1  ;;  %v3534_v49 = vunpack.c.l.bf16 %v3533_v36  ;;  %v3535_v8 = vunpack.c.h.bf16 %v3533_v36 }
  0xe7   :  { %v751_v48 = vadd.f32 %v750_v43, %v3532_v16  ;;  %v3537_v34 = vunpack.c.l.bf16 %v3536_v14  ;;  %v3538_v63 = vunpack.c.h.bf16 %v3536_v14  ;;  %v3540_v41 = vunpack.c.l.bf16 %v3539_v12 }
  0xe8   :  { %v764_v44 = vadd.f32 %v763_v2, %v3534_v49  ;;  %v777_v53 = vadd.f32 %v776_v5, %v3535_v8  ;;  %v3541_v26 = vunpack.c.h.bf16 %v3539_v12  ;;  %v3543_v42 = vunpack.c.l.bf16 %v3542_v45  ;;  %v3548_v5 = vld [vmem:[#allocation69_spill] sm:$0xff] }
  0xe9   :  { %v687_v19 = vadd.f32 %v686_v17, %v3537_v34  ;;  %v700_v54 = vadd.f32 %v699_v0, %v3538_v63  ;;  %v713_v27 = vadd.f32 %v712_v11, %v3540_v41  ;;  %v3544_v22 = vunpack.c.h.bf16 %v3542_v45  ;;  %v3551_v0 = vld [vmem:[#allocation70_spill] sm:$0xff] }
  0xea   :  { %v726_v6 = vadd.f32 %v725_v37, %v3541_v26  ;;  %v739_v43 = vadd.f32 %v738_v31, %v3543_v42  ;;  %v3546_v61 = vunpack.c.l.bf16 %v3545_v23  ;;  %v3547_v15 = vunpack.c.h.bf16 %v3545_v23  ;;  %v3554_v37 = vld [vmem:[#allocation71_spill] sm:$0xff] }
  0xeb   :  { %v752_v4 = vadd.f32 %v751_v48, %v3544_v22  ;;  %v3549_v24 = vunpack.c.l.bf16 %v3548_v5  ;;  %v3550_v17 = vunpack.c.h.bf16 %v3548_v5  ;;  %v3552_v9 = vunpack.c.l.bf16 %v3551_v0  ;;  %v3557_v48 = vld [vmem:[#allocation72_spill] sm:$0xff] }
  0xec   :  { %v765_v2 = vadd.f32 %v764_v44, %v3546_v61  ;;  %v778_v46 = vadd.f32 %v777_v53, %v3547_v15  ;;  %v3553_v11 = vunpack.c.h.bf16 %v3551_v0  ;;  %v3555_v62 = vunpack.c.l.bf16 %v3554_v37  ;;  %v3560_v53 = vld [vmem:[#allocation77_spill] sm:$0xff] }
  0xed   :  { %v688_v59 = vadd.f32 %v687_v19, %v3549_v24  ;;  %v701_v40 = vadd.f32 %v700_v54, %v3550_v17  ;;  %v714_v60 = vadd.f32 %v713_v27, %v3552_v9  ;;  %v3556_v31 = vunpack.c.h.bf16 %v3554_v37  ;;  %v3563_v54 = vld [vmem:[#allocation78_spill] sm:$0xff] }
  0xee   :  { %v727_v50 = vadd.f32 %v726_v6, %v3553_v11  ;;  %v740_v1 = vadd.f32 %v739_v43, %v3555_v62  ;;  %v3558_v36 = vunpack.c.l.bf16 %v3557_v48  ;;  %v3559_v44 = vunpack.c.h.bf16 %v3557_v48  ;;  %v3566_v6 = vld [vmem:[#allocation79_spill] sm:$0xff] }
  0xef   :  { %v753_v16 = vadd.f32 %v752_v4, %v3556_v31  ;;  %v3561_v14 = vunpack.c.l.bf16 %v3560_v53  ;;  %v3562_v19 = vunpack.c.h.bf16 %v3560_v53  ;;  %v3564_v12 = vunpack.c.l.bf16 %v3563_v54  ;;  %v3569_v4 = vld [vmem:[#allocation80_spill] sm:$0xff] }
  0xf0   :  { %v766_v49 = vadd.f32 %v765_v2, %v3558_v36  ;;  %v779_v8 = vadd.f32 %v778_v46, %v3559_v44  ;;  %v3565_v27 = vunpack.c.h.bf16 %v3563_v54  ;;  %v3567_v45 = vunpack.c.l.bf16 %v3566_v6  ;;  %v3572_v46 = vld [vmem:[#allocation85_spill] sm:$0xff] }
  0xf1   :  { %v689_v34 = vadd.f32 %v688_v59, %v3561_v14  ;;  %v702_v63 = vadd.f32 %v701_v40, %v3562_v19  ;;  %v715_v41 = vadd.f32 %v714_v60, %v3564_v12  ;;  %v3568_v43 = vunpack.c.h.bf16 %v3566_v6  ;;  %v3575_v40 = vld [vmem:[#allocation86_spill] sm:$0xff] }
  0xf2   :  { %v728_v26 = vadd.f32 %v727_v50, %v3565_v27  ;;  %v741_v42 = vadd.f32 %v740_v1, %v3567_v45  ;;  %v3570_v23 = vunpack.c.l.bf16 %v3569_v4  ;;  %v3571_v2 = vunpack.c.h.bf16 %v3569_v4  ;;  %v3578_v50 = vld [vmem:[#allocation87_spill] sm:$0xff] }
  0xf3   :  { %v754_v22 = vadd.f32 %v753_v16, %v3568_v43  ;;  %v3573_v5 = vunpack.c.l.bf16 %v3572_v46  ;;  %v3574_v59 = vunpack.c.h.bf16 %v3572_v46  ;;  %v3576_v0 = vunpack.c.l.bf16 %v3575_v40 }
  0xf4   :  { %v767_v61 = vadd.f32 %v766_v49, %v3570_v23  ;;  %v780_v15 = vadd.f32 %v779_v8, %v3571_v2  ;;  %v3577_v60 = vunpack.c.h.bf16 %v3575_v40  ;;  %v3579_v37 = vunpack.c.l.bf16 %v3578_v50 }
  0xf5   :  { %v690_v24 = vadd.f32 %v689_v34, %v3573_v5  ;;  %v703_v17 = vadd.f32 %v702_v63, %v3574_v59  ;;  %v716_v9 = vadd.f32 %v715_v41, %v3576_v0  ;;  %v3580_v1 = vunpack.c.h.bf16 %v3578_v50 }
  0xf6   :  { %v729_v11 = vadd.f32 %v728_v26, %v3577_v60  ;;  %v742_v62 = vadd.f32 %v741_v42, %v3579_v37  ;;  %v3581_v16 = vunpack.c.l.bf16 %v2276_v51  ;;  %v3582_v36 = vunpack.c.h.bf16 %v2276_v51  ;;  %v3589_v51 = vld [vmem:[#allocation92_spill] sm:$0xff] }
  0xf7   :  { %v755_v31 = vadd.f32 %v754_v22, %v3580_v1  ;;  %v3583_v44 = vunpack.c.l.bf16 %v2298_v33  ;;  %v3584_v53 = vunpack.c.h.bf16 %v2298_v33  ;;  %v3585_v34 = vunpack.c.l.bf16 %v2300_v32 }
  0xf8   :  { %v768_v48 = vadd.f32 %v767_v61, %v3581_v16  ;;  %v781_v49 = vadd.f32 %v780_v15, %v3582_v36  ;;  %v3586_v63 = vunpack.c.h.bf16 %v2300_v32  ;;  %v3587_v12 = vunpack.c.l.bf16 %v2306_v7 }
  0xf9   :  { %v691_v8 = vadd.f32 %v690_v24, %v3583_v44  ;;  %v704_v14 = vadd.f32 %v703_v17, %v3584_v53  ;;  %v717_v19 = vadd.f32 %v716_v9, %v3585_v34  ;;  %v3588_v27 = vunpack.c.h.bf16 %v2306_v7 }
  0xfa   :  { %v730_v54 = vadd.f32 %v729_v11, %v3586_v63  ;;  %v743_v41 = vadd.f32 %v742_v62, %v3587_v12  ;;  %v3590_v6 = vunpack.c.l.bf16 %v3589_v51  ;;  %v3591_v42 = vunpack.c.h.bf16 %v3589_v51 }
  0xfb   :  { %v756_v26 = vadd.f32 %v755_v31, %v3588_v27  ;;  %v692_v33 = vrot.slane %v691_v8, 4  ;;  %v705_v22 = vrot.slane %v704_v14, 4  ;;  %v718_v4 = vrot.slane %v717_v19, 4 }
  0xfc   :  { %v769_v45 = vadd.f32 %v768_v48, %v3590_v6  ;;  %v782_v43 = vadd.f32 %v781_v49, %v3591_v42  ;;  %v731_v23 = vrot.slane %v730_v54, 4  ;;  %v744_v61 = vrot.slane %v743_v41, 4 }
  0xfd   :  { %v757_v2 = vrot.slane %v756_v26, 4  ;;  %v693_v46 = vadd.f32 %v692_v33, %v691_v8  ;;  %v706_v5 = vadd.f32 %v705_v22, %v704_v14  ;;  %v719_v24 = vadd.f32 %v718_v4, %v717_v19 }
  0xfe   :  { %v770_v32 = vrot.slane %v769_v45, 4  ;;  %v783_v15 = vrot.slane %v782_v43, 4  ;;  %v732_v59 = vadd.f32 %v731_v23, %v730_v54  ;;  %v745_v7 = vadd.f32 %v744_v61, %v743_v41  ;;  %v3594_v23 = vld [vmem:[#allocation49_spill] sm:$0xff] }
  0xff   :  { %v758_v17 = vadd.f32 %v757_v2, %v756_v26  ;;  %v694_v9 = vrot.slane %v693_v46, 2  ;;  %v707_v60 = vrot.slane %v706_v5, 2  ;;  %v720_v11 = vrot.slane %v719_v24, 2 }
 0x100   :  { %v771_v40 = vadd.f32 %v770_v32, %v769_v45  ;;  %v784_v0 = vadd.f32 %v783_v15, %v782_v43  ;;  %v733_v50 = vrot.slane %v732_v59, 2  ;;  %v746_v37 = vrot.slane %v745_v7, 2 }
 0x101   :  { %v759_v62 = vrot.slane %v758_v17, 2  ;;  %v695_v16 = vadd.f32 %v694_v9, %v693_v46  ;;  %v708_v48 = vadd.f32 %v707_v60, %v706_v5  ;;  %v721_v36 = vadd.f32 %v720_v11, %v719_v24  ;;  %v3598_v5 = vld [vmem:[#allocation42_spill] sm:$0xff]  ;;  %v3604_v60 = vld [vmem:[#allocation43_spill] sm:$0xff] }
 0x102   :  { %v772_v1 = vrot.slane %v771_v40, 2  ;;  %v785_v31 = vrot.slane %v784_v0, 2  ;;  %v734_v49 = vadd.f32 %v733_v50, %v732_v59  ;;  %v747_v44 = vadd.f32 %v746_v37, %v745_v7  ;;  %v3600_v59 = vld [vmem:[#allocation50_spill] sm:$0xff]  ;;  %v3606_v50 = vld [vmem:[#allocation51_spill] sm:$0xff] }
 0x103   :  { %v760_v8 = vadd.f32 %v759_v62, %v758_v17  ;;  %v696_v34 = vrot.slane %v695_v16, 1  ;;  %v709_v19 = vrot.slane %v708_v48, 1  ;;  %v722_v63 = vrot.slane %v721_v36, 1 }
 0x104   :  { %v773_v53 = vadd.f32 %v772_v1, %v771_v40  ;;  %v2766_v14 = vadd.f32 %v785_v31, %v784_v0  ;;  %v735_v54 = vrot.slane %v734_v49, 1  ;;  %v2771_v12 = vadd.f32 %v683_v30, %v2616_v38  ;;  %v3592_v38 = vld [vmem:[#allocation41_spill] sm:$0xff] }
 0x105   :  { %v748_v41 = vrot.slane %v747_v44, 1  ;;  %v761_v27 = vrot.slane %v760_v8, 1  ;;  %v2773_v51 = vadd.f32 %v696_v34, %v695_v16  ;;  %v2775_v6 = vadd.f32 %v709_v19, %v708_v48  ;;  %v3610_v48 = vld [vmem:[#allocation44_spill] sm:$0xff] }
 0x106   :  { %v774_v26 = vrot.slane %v773_v53, 1  ;;  %v2777_v45 = vadd.f32 %v722_v63, %v721_v36  ;;  %v787_v42 = vrot.slane %v2766_v14, 1  ;;  %v2780_v43 = vadd.f32 %v735_v54, %v734_v49  ;;  %v3612_v49 = vld [vmem:[#allocation52_spill] sm:$0xff]  ;;  %v3616_v63 = vld [vmem:[#allocation57_spill] sm:$0xff] }
 0x107   :  { %v2782_v33 = vadd.f32 %v748_v41, %v747_v44  ;;  %v2784_v22 = vadd.f32 %v761_v27, %v760_v8  ;;  %v3593_v30 = vunpack.c.l.bf16 %v3592_v38  ;;  %v3595_v61 = vunpack.c.l.bf16 %v3594_v23 }
 0x108   :  { %v2786_v4 = vadd.f32 %v774_v26, %v773_v53  ;;  %v3596_v32 = vunpack.c.h.bf16 %v3592_v38  ;;  %v3597_v15 = vunpack.c.h.bf16 %v3594_v23  ;;  %v3599_v24 = vunpack.c.l.bf16 %v3598_v5  ;;  %v3619_v38 = vld [vmem:[#allocation58_spill] sm:$0xff] }
 0x109   :  { %v789_v2 = vadd.f32 %v3595_v61, %v3593_v30  ;;  %v3601_v7 = vunpack.c.l.bf16 %v3600_v59  ;;  %v3602_v40 = vunpack.c.h.bf16 %v3598_v5  ;;  %v3603_v0 = vunpack.c.h.bf16 %v3600_v59 }
 0x10a   :  { %v802_v46 = vadd.f32 %v3597_v15, %v3596_v32  ;;  %v3605_v11 = vunpack.c.l.bf16 %v3604_v60  ;;  %v3607_v37 = vunpack.c.l.bf16 %v3606_v50  ;;  %v3608_v1 = vunpack.c.h.bf16 %v3604_v60  ;;  %v3622_v15 = vld [vmem:[#allocation59_spill] sm:$0xff] }
 0x10b   :  { %v815_v17 = vadd.f32 %v3601_v7, %v3599_v24  ;;  %v828_v9 = vadd.f32 %v3603_v0, %v3602_v40  ;;  %v3609_v31 = vunpack.c.h.bf16 %v3606_v50  ;;  %v3611_v36 = vunpack.c.l.bf16 %v3610_v48  ;;  %v3625_v40 = vld [vmem:[#allocation60_spill] sm:$0xff]  ;;  %v3628_v50 = vld [vmem:[#allocation65_spill] sm:$0xff] }
 0x10c   :  { %v841_v62 = vadd.f32 %v3607_v37, %v3605_v11  ;;  %v3613_v44 = vunpack.c.l.bf16 %v3612_v49  ;;  %v3614_v53 = vunpack.c.h.bf16 %v3610_v48  ;;  %v3615_v34 = vunpack.c.h.bf16 %v3612_v49  ;;  %v3634_v49 = vld [vmem:[#allocation67_spill] sm:$0xff] }
 0x10d   :  { %v854_v16 = vadd.f32 %v3609_v31, %v3608_v1  ;;  %v3617_v54 = vunpack.c.l.bf16 %v3616_v63  ;;  %v3618_v27 = vunpack.c.h.bf16 %v3616_v63  ;;  %v3620_v30 = vunpack.c.l.bf16 %v3619_v38  ;;  %v3631_v31 = vld [vmem:[#allocation66_spill] sm:$0xff] }
 0x10e   :  { %v867_v8 = vadd.f32 %v3613_v44, %v3611_v36  ;;  %v880_v19 = vadd.f32 %v3615_v34, %v3614_v53  ;;  %v3621_v61 = vunpack.c.h.bf16 %v3619_v38  ;;  %v3623_v5 = vunpack.c.l.bf16 %v3622_v15  ;;  %v3637_v34 = vld [vmem:[#allocation68_spill] sm:$0xff] }
 0x10f   :  { %v790_v41 = vadd.f32 %v789_v2, %v3617_v54  ;;  %v803_v26 = vadd.f32 %v802_v46, %v3618_v27  ;;  %v816_v23 = vadd.f32 %v815_v17, %v3620_v30  ;;  %v3624_v59 = vunpack.c.h.bf16 %v3622_v15  ;;  %v3640_v27 = vld [vmem:[#allocation73_spill] sm:$0xff] }
 0x110   :  { %v829_v32 = vadd.f32 %v828_v9, %v3621_v61  ;;  %v842_v24 = vadd.f32 %v841_v62, %v3623_v5  ;;  %v3626_v0 = vunpack.c.l.bf16 %v3625_v40  ;;  %v3627_v2 = vunpack.c.h.bf16 %v3625_v40  ;;  %v3643_v61 = vld [vmem:[#allocation74_spill] sm:$0xff] }
 0x111   :  { %v855_v7 = vadd.f32 %v854_v16, %v3624_v59  ;;  %v3629_v46 = vunpack.c.l.bf16 %v3628_v50  ;;  %v3630_v17 = vunpack.c.h.bf16 %v3628_v50  ;;  %v3632_v9 = vunpack.c.l.bf16 %v3631_v31  ;;  %v3646_v59 = vld [vmem:[#allocation75_spill] sm:$0xff] }
 0x112   :  { %v868_v60 = vadd.f32 %v867_v8, %v3626_v0  ;;  %v881_v11 = vadd.f32 %v880_v19, %v3627_v2  ;;  %v3633_v62 = vunpack.c.h.bf16 %v3631_v31  ;;  %v3635_v16 = vunpack.c.l.bf16 %v3634_v49  ;;  %v3649_v2 = vld [vmem:[#allocation76_spill] sm:$0xff] }
 0x113   :  { %v791_v37 = vadd.f32 %v790_v41, %v3629_v46  ;;  %v804_v1 = vadd.f32 %v803_v26, %v3630_v17  ;;  %v817_v48 = vadd.f32 %v816_v23, %v3632_v9  ;;  %v3636_v8 = vunpack.c.h.bf16 %v3634_v49  ;;  %v3652_v17 = vld [vmem:[#allocation81_spill] sm:$0xff] }
 0x114   :  { %v830_v36 = vadd.f32 %v829_v32, %v3633_v62  ;;  %v843_v44 = vadd.f32 %v842_v24, %v3635_v16  ;;  %v3638_v19 = vunpack.c.l.bf16 %v3637_v34  ;;  %v3639_v54 = vunpack.c.h.bf16 %v3637_v34  ;;  %v3655_v62 = vld [vmem:[#allocation82_spill] sm:$0xff] }
 0x115   :  { %v856_v53 = vadd.f32 %v855_v7, %v3636_v8  ;;  %v3641_v26 = vunpack.c.l.bf16 %v3640_v27  ;;  %v3642_v30 = vunpack.c.h.bf16 %v3640_v27  ;;  %v3644_v32 = vunpack.c.l.bf16 %v3643_v61  ;;  %v3658_v8 = vld [vmem:[#allocation83_spill] sm:$0xff] }
 0x116   :  { %v869_v63 = vadd.f32 %v868_v60, %v3638_v19  ;;  %v882_v41 = vadd.f32 %v881_v11, %v3639_v54  ;;  %v3645_v5 = vunpack.c.h.bf16 %v3643_v61  ;;  %v3647_v7 = vunpack.c.l.bf16 %v3646_v59  ;;  %v3661_v54 = vld [vmem:[#allocation84_spill] sm:$0xff] }
 0x117   :  { %v792_v38 = vadd.f32 %v791_v37, %v3641_v26  ;;  %v805_v23 = vadd.f32 %v804_v1, %v3642_v30  ;;  %v818_v15 = vadd.f32 %v817_v48, %v3644_v32  ;;  %v3648_v0 = vunpack.c.h.bf16 %v3646_v59  ;;  %v3664_v30 = vld [vmem:[#allocation88_spill] sm:$0xff] }
 0x118   :  { %v831_v24 = vadd.f32 %v830_v36, %v3645_v5  ;;  %v844_v40 = vadd.f32 %v843_v44, %v3647_v7  ;;  %v3650_v11 = vunpack.c.l.bf16 %v3649_v2  ;;  %v3651_v46 = vunpack.c.h.bf16 %v3649_v2  ;;  %v3667_v5 = vld [vmem:[#allocation89_spill] sm:$0xff] }
 0x119   :  { %v857_v60 = vadd.f32 %v856_v53, %v3648_v0  ;;  %v3653_v1 = vunpack.c.l.bf16 %v3652_v17  ;;  %v3654_v9 = vunpack.c.h.bf16 %v3652_v17  ;;  %v3656_v36 = vunpack.c.l.bf16 %v3655_v62  ;;  %v3670_v0 = vld [vmem:[#allocation90_spill] sm:$0xff] }
 0x11a   :  { %v870_v50 = vadd.f32 %v869_v63, %v3650_v11  ;;  %v883_v37 = vadd.f32 %v882_v41, %v3651_v46  ;;  %v3657_v16 = vunpack.c.h.bf16 %v3655_v62  ;;  %v3659_v53 = vunpack.c.l.bf16 %v3658_v8  ;;  %v3673_v46 = vld [vmem:[#allocation91_spill] sm:$0xff] }
 0x11b   :  { %v793_v31 = vadd.f32 %v792_v38, %v3653_v1  ;;  %v806_v48 = vadd.f32 %v805_v23, %v3654_v9  ;;  %v819_v49 = vadd.f32 %v818_v15, %v3656_v36  ;;  %v3660_v19 = vunpack.c.h.bf16 %v3658_v8  ;;  %v3676_v9 = vld [vmem:[#allocation93_spill] sm:$0xff] }
 0x11c   :  { %v832_v44 = vadd.f32 %v831_v24, %v3657_v16  ;;  %v845_v34 = vadd.f32 %v844_v40, %v3659_v53  ;;  %v3662_v41 = vunpack.c.l.bf16 %v3661_v54  ;;  %v3663_v26 = vunpack.c.h.bf16 %v3661_v54  ;;  %v3679_v16 = vld [vmem:[#allocation94_spill] sm:$0xff] }
 0x11d   :  { %v858_v63 = vadd.f32 %v857_v60, %v3660_v19  ;;  %v3665_v23 = vunpack.c.l.bf16 %v3664_v30  ;;  %v3666_v32 = vunpack.c.h.bf16 %v3664_v30  ;;  %v3668_v24 = vunpack.c.l.bf16 %v3667_v5  ;;  %v3682_v19 = vld [vmem:[#allocation95_spill] sm:$0xff] }
 0x11e   :  { %v871_v27 = vadd.f32 %v870_v50, %v3662_v41  ;;  %v884_v38 = vadd.f32 %v883_v37, %v3663_v26  ;;  %v3669_v7 = vunpack.c.h.bf16 %v3667_v5  ;;  %v3671_v60 = vunpack.c.l.bf16 %v3670_v0 }
 0x11f   :  { %v794_v61 = vadd.f32 %v793_v31, %v3665_v23  ;;  %v807_v15 = vadd.f32 %v806_v48, %v3666_v32  ;;  %v820_v59 = vadd.f32 %v819_v49, %v3668_v24  ;;  %v3672_v11 = vunpack.c.h.bf16 %v3670_v0 }
 0x120   :  { %v833_v40 = vadd.f32 %v832_v44, %v3669_v7  ;;  %v846_v2 = vadd.f32 %v845_v34, %v3671_v60  ;;  %v3674_v37 = vunpack.c.l.bf16 %v3673_v46  ;;  %v3675_v1 = vunpack.c.h.bf16 %v3673_v46 }
 0x121   :  { %v859_v50 = vadd.f32 %v858_v63, %v3672_v11  ;;  %v3677_v48 = vunpack.c.l.bf16 %v3676_v9  ;;  %v3678_v36 = vunpack.c.h.bf16 %v3676_v9  ;;  %v3680_v44 = vunpack.c.l.bf16 %v3679_v16 }
 0x122   :  { %v872_v17 = vadd.f32 %v871_v27, %v3674_v37  ;;  %v885_v31 = vadd.f32 %v884_v38, %v3675_v1  ;;  %v3681_v53 = vunpack.c.h.bf16 %v3679_v16  ;;  %v3683_v63 = vunpack.c.l.bf16 %v3682_v19 }
 0x123   :  { %v795_v62 = vadd.f32 %v794_v61, %v3677_v48  ;;  %v808_v49 = vadd.f32 %v807_v15, %v3678_v36  ;;  %v821_v8 = vadd.f32 %v820_v59, %v3680_v44  ;;  %v3684_v41 = vunpack.c.h.bf16 %v3682_v19 }
 0x124   :  { %v834_v34 = vadd.f32 %v833_v40, %v3681_v53  ;;  %v847_v54 = vadd.f32 %v846_v2, %v3683_v63  ;;  %v3685_v26 = vunpack.c.l.bf16 %v2324_v20  ;;  %v886_v30 = vadd.f32 %v885_v31, %v476_v55 }
 0x125   :  { %v860_v27 = vadd.f32 %v859_v50, %v3684_v41  ;;  %v796_v23 = vrot.slane %v795_v62, 4  ;;  %v809_v61 = vrot.slane %v808_v49, 4  ;;  %v822_v32 = vrot.slane %v821_v8, 4 }
 0x126   :  { %v873_v38 = vadd.f32 %v872_v17, %v3685_v26  ;;  %v835_v15 = vrot.slane %v834_v34, 4  ;;  %v848_v5 = vrot.slane %v847_v54, 4  ;;  %v887_v7 = vrot.slane %v886_v30, 4 }
 0x127   :  { %v861_v24 = vrot.slane %v860_v27, 4  ;;  %v797_v40 = vadd.f32 %v796_v23, %v795_v62  ;;  %v810_v0 = vadd.f32 %v809_v61, %v808_v49  ;;  %v823_v60 = vadd.f32 %v822_v32, %v821_v8 }
 0x128   :  { %v874_v59 = vrot.slane %v873_v38, 4  ;;  %v836_v2 = vadd.f32 %v835_v15, %v834_v34  ;;  %v849_v11 = vadd.f32 %v848_v5, %v847_v54  ;;  %v888_v37 = vadd.f32 %v887_v7, %v886_v30 }
 0x129   :  { %v862_v50 = vadd.f32 %v861_v24, %v860_v27  ;;  %v798_v17 = vrot.slane %v797_v40, 2  ;;  %v811_v1 = vrot.slane %v810_v0, 2  ;;  %v824_v20 = vrot.slane %v823_v60, 2 }
 0x12a   :  { %v875_v46 = vadd.f32 %v874_v59, %v873_v38  ;;  %v837_v55 = vrot.slane %v836_v2, 2  ;;  %v850_v31 = vrot.slane %v849_v11, 2  ;;  %v889_v36 = vrot.slane %v888_v37, 2 }
 0x12b   :  { %v863_v9 = vrot.slane %v862_v50, 2  ;;  %v799_v16 = vadd.f32 %v798_v17, %v797_v40  ;;  %v812_v44 = vadd.f32 %v811_v1, %v810_v0  ;;  %v825_v53 = vadd.f32 %v824_v20, %v823_v60 }
 0x12c   :  { %v876_v48 = vrot.slane %v875_v46, 2  ;;  %v838_v19 = vadd.f32 %v837_v55, %v836_v2  ;;  %v851_v62 = vadd.f32 %v850_v31, %v849_v11  ;;  %v890_v34 = vadd.f32 %v889_v36, %v888_v37 }
 0x12d   :  { %v864_v49 = vadd.f32 %v863_v9, %v862_v50  ;;  %v800_v63 = vrot.slane %v799_v16, 1  ;;  %v813_v54 = vrot.slane %v812_v44, 1  ;;  %v826_v41 = vrot.slane %v825_v53, 1 }
 0x12e   :  { %v877_v8 = vadd.f32 %v876_v48, %v875_v46  ;;  %v839_v27 = vrot.slane %v838_v19, 1  ;;  %v852_v26 = vrot.slane %v851_v62, 1  ;;  %v891_v23 = vrot.slane %v890_v34, 1 }
 0x12f   :  { %v865_v38 = vrot.slane %v864_v49, 1  ;;  %v788_v61 = vadd.f32 %v787_v42, %v2766_v14  ;;  %v801_v32 = vadd.f32 %v800_v63, %v799_v16  ;;  %v814_v15 = vadd.f32 %v813_v54, %v812_v44 }
 0x130   :  { %v878_v30 = vrot.slane %v877_v8, 1  ;;  %v827_v5 = vadd.f32 %v826_v41, %v825_v53  ;;  %v840_v24 = vadd.f32 %v839_v27, %v838_v19  ;;  %v853_v59 = vadd.f32 %v852_v26, %v851_v62 }
 0x131   :  { %v866_v7 = vadd.f32 %v865_v38, %v864_v49  ;;  %v892_v0 = vadd.f32 %v891_v23, %v890_v34  ;;  %v925_v60 = vcombine.low %v2473_v13, %v2475_v28  ;;  %v930_v2 = vlaneseq  ;;  %v1124_v34 = vld [vmem:[#allocation9] sm:$0xff] }
 0x132   :  { %v879_v40 = vadd.f32 %v878_v30, %v877_v8  ;;  %v926_v11 = vcombine.low %v2477_v35, %v2480_v21  ;;  %v1739_v50 = vmov 1983009808   ;;  %v942_v14 = vcombine.low %v2482_v56, %v2484_v25 }
 0x133   :  { %v928_v46 = vunpack.c.l.s4 %v1739_v50  ;;  %v943_v42 = vcombine.low %v2486_v39, %v2621_v29  ;;  %v2927_v37 = vshrl.u32 %v930_v2, 7  ;;  %v959_v17 = vcombine.low %v2623_v57, %v2625_v10  ;;  %v1118_v39 = vld [vmem:[#allocation11] sm:$0xff]  ;;  %v1119_v29 = vld [vmem:[#allocation11 + $0x8] sm:$0xff] }
 0x134   :  { %v960_v13 = vcombine.low %v2627_v3, %v2630_v52  ;;  %v976_v28 = vcombine.low %v2632_v58, %v2634_v18  ;;  %v977_v21 = vcombine.low %v2636_v47, %v2771_v12  ;;  %v993_v56 = vcombine.low %v2773_v51, %v2775_v6 }
 0x135   :  { %v929_v35 = vunpack.c.0.s8 %v928_v46  ;;  %v994_v25 = vcombine.low %v2777_v45, %v2780_v43  ;;  %v1010_v57 = vcombine.low %v2782_v33, %v2784_v22  ;;  %v1011_v10 = vcombine.low %v2786_v4, %v788_v61 }
 0x136   :  { %v1027_v3 = vcombine.low %v801_v32, %v814_v15  ;;  %v1028_v52 = vcombine.low %v827_v5, %v840_v24  ;;  %v1044_v18 = vcombine.low %v853_v59, %v866_v7  ;;  %v1045_v47 = vcombine.low %v879_v40, %v892_v0 }
 0x137   :  { %v2945_v58 = vsub.s32 %v929_v35, %v2927_v37  ;;  %v1120_v12 = vadd.f32 1e-05, %v1118_v39  ;;  %v1121_v51 = vadd.f32 1e-05, %v1119_v29  ;;  %v2964_v41 = vsub.s32 0, %v2927_v37 }
 0x138   :  { %v2967_v38 = vsub.s32 1, %v2927_v37  ;;  %v2971_v32 = vsub.s32 2, %v2927_v37  ;;  %v2976_v59 = vsub.s32 3, %v2927_v37 }
 0x139   :  { %v933_v6 = vrot.slane %v925_v60, %v2945_v58  ;;  %v940_v45 = vrot.slane %v926_v11, %v2945_v58  ;;  %v950_v43 = vrot.slane %v942_v14, %v2945_v58  ;;  %v957_v33 = vrot.slane %v943_v42, %v2945_v58 }
 0x13a   :  { %v967_v22 = vrot.slane %v959_v17, %v2945_v58  ;;  %v974_v4 = vrot.slane %v960_v13, %v2945_v58  ;;  %v984_v1 = vrot.slane %v976_v28, %v2945_v58  ;;  %v991_v20 = vrot.slane %v977_v21, %v2945_v58 }
 0x13b   :  { %v941_v55 = vcombine.low %v933_v6, %v940_v45  ;;  %v958_v31 = vcombine.low %v950_v43, %v957_v33  ;;  %v1001_v9 = vrot.slane %v993_v56, %v2945_v58  ;;  %v1008_v48 = vrot.slane %v994_v25, %v2945_v58  ;;  %v1125_v25 = vld [vmem:[#allocation9 + $0x8] sm:$0xff] }
 0x13c   :  { %v975_v36 = vcombine.low %v967_v22, %v974_v4  ;;  %v992_v16 = vcombine.low %v984_v1, %v991_v20  ;;  %v1018_v44 = vrot.slane %v1010_v57, %v2945_v58  ;;  %v1025_v53 = vrot.slane %v1011_v10, %v2945_v58 }
 0x13d   :  { %v1009_v19 = vcombine.low %v1001_v9, %v1008_v48  ;;  %v1035_v62 = vrot.slane %v1027_v3, %v2945_v58  ;;  %v1042_v49 = vrot.slane %v1028_v52, %v2945_v58  ;;  %v1052_v8 = vrot.slane %v1044_v18, %v2945_v58 }
 0x13e   :  { %v1026_v63 = vcombine.low %v1018_v44, %v1025_v53  ;;  %v1059_v54 = vrot.slane %v1045_v47, %v2945_v58  ;;  %1588 = vrsqrt.f32 %v1120_v12  ;;  %v1131_v61 = vrot.slane %v1124_v34, %v2964_v41 }
 0x13f   :  { %v1043_v27 = vcombine.low %v1035_v62, %v1042_v49  ;;  %v1065_v26 = vrot.slane %v1009_v19, 7  ;;  %1590 = vrsqrt.f32 %v1121_v51  ;;  %v1135_v24 = vrot.slane %v1124_v34, %v2967_v38 }
 0x140   :  { %v1060_v30 = vcombine.low %v1052_v8, %v1059_v54  ;;  %v1076_v23 = vrot.slane %v1026_v63, 7  ;;  %v1139_v60 = vrot.slane %v1124_v34, %v2971_v32  ;;  %v1143_v46 = vrot.slane %v1124_v34, %v2976_v59  ;;  %v1268_v8 = vld [vmem:[#allocation6] sm:$0xff] }
 0x141   :  { %v1067_v15 = vsel %vm1066_vm0, %v1065_v26, %v941_v55  ;;  %v1083_v5 = vrot.slane %v1043_v27, 7  ;;  %v2999_v10 = vsub.s32 4, %v2927_v37  ;;  %v3005_v18 = vsub.s32 5, %v2927_v37 }
 0x142   :  { %v1069_v7 = vsel %vm1068_vm1, %v1065_v26, %v1067_v15  ;;  %v1077_v40 = vsel %vm1066_vm0, %v1076_v23, %v958_v31  ;;  %v1090_v0 = vrot.slane %v1060_v30, 7  ;;  %v3008_v47 = vsub.s32 6, %v2927_v37  ;;  %v3029_v30 = vld [vmem:[#allocation8] sm:$0xff] }
 0x143   :  { %v1071_v2 = vsel %vm1070_vm2, %v1065_v26, %v1069_v7  ;;  %v1078_v11 = vsel %vm1068_vm1, %v1076_v23, %v1077_v40  ;;  %v1084_v50 = vsel %vm1066_vm0, %v1083_v5, %v975_v36  ;;  %v1147_v6 = vrot.slane %v1124_v34, %v2999_v10 }
 0x144   :  { %v1073_v14 = vsel %vm1072_vm3, %v1065_v26, %v1071_v2  ;;  %v1079_v42 = vsel %vm1070_vm2, %v1076_v23, %v1078_v11  ;;  %v1085_v17 = vsel %vm1068_vm1, %v1083_v5, %v1084_v50  ;;  %v1091_v13 = vsel %vm1066_vm0, %v1090_v0, %v992_v16  ;;  %v1269_v26 = vld [vmem:[#allocation6 + $0x8] sm:$0xff] }
 0x145   :  { %v1080_v28 = vsel %vm1072_vm3, %v1076_v23, %v1079_v42  ;;  %v1086_v35 = vsel %vm1070_vm2, %v1083_v5, %v1085_v17  ;;  %v1092_v21 = vsel %vm1068_vm1, %v1090_v0, %v1091_v13  ;;  %v2992_v56 = vmul.f32 0.015625, %v1073_v14 }
 0x146   :  { %v1087_v39 = vsel %vm1072_vm3, %v1083_v5, %v1086_v35  ;;  %v1093_v29 = vsel %vm1070_vm2, %v1090_v0, %v1092_v21  ;;  %v2996_v57 = vmul.f32 0.015625, %v1080_v28  ;;  %v3014_v45 = vsub.s32 7, %v2927_v37 }
 0x147   :  { %v1094_v3 = vsel %vm1072_vm3, %v1090_v0, %v1093_v29  ;;  %v3002_v52 = vmul.f32 0.015625, %v1087_v39  ;;  %v1163_v43 = vrot.slane %v1125_v25, %v2964_v41  ;;  %v1151_v22 = vrot.slane %v1124_v34, %v3005_v18 }
 0x148   :  { %v1589_v12 = vpop.eup %1588  ;;  %v3010_v51 = vmul.f32 0.015625, %v1094_v3  ;;  %v1155_v4 = vrot.slane %v1124_v34, %v3008_v47  ;;  %v1167_v1 = vrot.slane %v1125_v25, %v2967_v38  ;;  %v1171_v20 = vrot.slane %v1125_v25, %v2971_v32 }
 0x149   :  { %v1591_v33 = vpop.eup %1590  ;;  %v1159_v55 = vrot.slane %v1124_v34, %v3014_v45  ;;  %v1175_v31 = vrot.slane %v1125_v25, %v2976_v59  ;;  %v1179_v9 = vrot.slane %v1125_v25, %v2999_v10  ;;  %v1183_v37 = vrot.slane %v1125_v25, %v3005_v18 }
 0x14a   :  { %v1187_v48 = vrot.slane %v1125_v25, %v3008_v47  ;;  %v1191_v36 = vrot.slane %v1125_v25, %v3014_v45  ;;  %v1192_v16 = vcombine.low %v1131_v61, %v1135_v24  ;;  %v1193_v44 = vcombine.low %v1139_v60, %v1143_v46 }
 0x14b   :  { %v1209_v53 = vcombine.low %v1147_v6, %v1151_v22  ;;  %v1210_v19 = vcombine.low %v1155_v4, %v1159_v55  ;;  %v1226_v62 = vcombine.low %v1163_v43, %v1167_v1  ;;  %v1227_v49 = vcombine.low %v1171_v20, %v1175_v31 }
 0x14c   :  { %v1200_v63 = vrot.slane %v1192_v16, %v2945_v58  ;;  %v1207_v34 = vrot.slane %v1193_v44, %v2945_v58  ;;  %v1243_v54 = vcombine.low %v1179_v9, %v1183_v37  ;;  %v1244_v27 = vcombine.low %v1187_v48, %v1191_v36 }
 0x14d   :  { %v1217_v23 = vrot.slane %v1209_v53, %v2945_v58  ;;  %v1224_v15 = vrot.slane %v1210_v19, %v2945_v58  ;;  %v1234_v61 = vrot.slane %v1226_v62, %v2945_v58  ;;  %v1241_v5 = vrot.slane %v1227_v49, %v2945_v58 }
 0x14e   :  { %v1208_v24 = vcombine.low %v1200_v63, %v1207_v34  ;;  %v1251_v7 = vrot.slane %v1243_v54, %v2945_v58  ;;  %v1258_v40 = vrot.slane %v1244_v27, %v2945_v58  ;;  %v1270_v0 = vmul.f32 %v1589_v12, %v1268_v8  ;;  %v1415_v34 = vld [vmem:[#allocation8 + $0x8] sm:$0xff] }
 0x14f   :  { %v1225_v60 = vcombine.low %v1217_v23, %v1224_v15  ;;  %v1242_v2 = vcombine.low %v1234_v61, %v1241_v5  ;;  %v1271_v11 = vmul.f32 %v1591_v33, %v1269_v26  ;;  %v1421_v50 = vrot.slane %v3029_v30, %v2964_v41 }
 0x150   :  { %v1259_v46 = vcombine.low %v1251_v7, %v1258_v40  ;;  %v1264_v14 = vsub.f32 %v2992_v56, %v1208_v24  ;;  %v1277_v42 = vrot.slane %v1270_v0, %v2964_v41  ;;  %v1281_v17 = vrot.slane %v1270_v0, %v2967_v38 }
 0x151   :  { %v1265_v13 = vsub.f32 %v2996_v57, %v1225_v60  ;;  %v1266_v28 = vsub.f32 %v3002_v52, %v1242_v2  ;;  %v1285_v35 = vrot.slane %v1270_v0, %v2971_v32  ;;  %v1289_v21 = vrot.slane %v1270_v0, %v2976_v59 }
 0x152   :  { %v1267_v25 = vsub.f32 %v3010_v51, %v1259_v46  ;;  %v1293_v39 = vrot.slane %v1270_v0, %v2999_v10  ;;  %v1297_v29 = vrot.slane %v1270_v0, %v3005_v18  ;;  %v1301_v56 = vrot.slane %v1270_v0, %v3008_v47 }
 0x153   :  { %v1305_v3 = vrot.slane %v1270_v0, %v3014_v45  ;;  %v1309_v12 = vrot.slane %v1271_v11, %v2964_v41  ;;  %v1313_v57 = vrot.slane %v1271_v11, %v2967_v38  ;;  %v1317_v52 = vrot.slane %v1271_v11, %v2971_v32 }
 0x154   :  { %v1321_v6 = vrot.slane %v1271_v11, %v2976_v59  ;;  %v1325_v43 = vrot.slane %v1271_v11, %v2999_v10  ;;  %v1329_v51 = vrot.slane %v1271_v11, %v3005_v18  ;;  %v1333_v33 = vrot.slane %v1271_v11, %v3008_v47 }
 0x155   :  { %v1337_v22 = vrot.slane %v1271_v11, %v3014_v45  ;;  %v1338_v4 = vcombine.low %v1277_v42, %v1281_v17  ;;  %v1339_v1 = vcombine.low %v1285_v35, %v1289_v21  ;;  %v1355_v20 = vcombine.low %v1293_v39, %v1297_v29 }
 0x156   :  { %v1356_v55 = vcombine.low %v1301_v56, %v1305_v3  ;;  %v1372_v31 = vcombine.low %v1309_v12, %v1313_v57  ;;  %v1373_v9 = vcombine.low %v1317_v52, %v1321_v6  ;;  %v1389_v37 = vcombine.low %v1325_v43, %v1329_v51 }
 0x157   :  { %v1346_v48 = vrot.slane %v1338_v4, %v2945_v58  ;;  %v1353_v36 = vrot.slane %v1339_v1, %v2945_v58  ;;  %v1363_v16 = vrot.slane %v1355_v20, %v2945_v58  ;;  %v1390_v44 = vcombine.low %v1333_v33, %v1337_v22 }
 0x158   :  { %v1370_v53 = vrot.slane %v1356_v55, %v2945_v58  ;;  %v1380_v19 = vrot.slane %v1372_v31, %v2945_v58  ;;  %v1387_v62 = vrot.slane %v1373_v9, %v2945_v58  ;;  %v1397_v49 = vrot.slane %v1389_v37, %v2945_v58 }
 0x159   :  { %v1354_v8 = vcombine.low %v1346_v48, %v1353_v36  ;;  %v1404_v63 = vrot.slane %v1390_v44, %v2945_v58  ;;  %v1425_v54 = vrot.slane %v3029_v30, %v2967_v38  ;;  %v1429_v27 = vrot.slane %v3029_v30, %v2971_v32 }
 0x15a   :  { %v1371_v26 = vcombine.low %v1363_v16, %v1370_v53  ;;  %v1388_v23 = vcombine.low %v1380_v19, %v1387_v62  ;;  %v1433_v15 = vrot.slane %v3029_v30, %v2976_v59  ;;  %v1437_v61 = vrot.slane %v3029_v30, %v2999_v10 }
 0x15b   :  { %v1405_v5 = vcombine.low %v1397_v49, %v1404_v63  ;;  %v1410_v24 = vmul.f32 %v1354_v8, %v1264_v14  ;;  %v1441_v7 = vrot.slane %v3029_v30, %v3005_v18  ;;  %v1445_v40 = vrot.slane %v3029_v30, %v3008_v47 }
 0x15c   :  { %v1411_v0 = vmul.f32 %v1371_v26, %v1265_v13  ;;  %v1412_v60 = vmul.f32 %v1388_v23, %v1266_v28  ;;  %v1449_v2 = vrot.slane %v3029_v30, %v3014_v45  ;;  %v1453_v11 = vrot.slane %v1415_v34, %v2964_v41 }
 0x15d   :  { %v1413_v46 = vmul.f32 %v1405_v5, %v1267_v25  ;;  %v1457_v42 = vrot.slane %v1415_v34, %v2967_v38  ;;  %v1461_v17 = vrot.slane %v1415_v34, %v2971_v32  ;;  %v1465_v14 = vrot.slane %v1415_v34, %v2976_v59 }
 0x15e   :  { %v1469_v35 = vrot.slane %v1415_v34, %v2999_v10  ;;  %v1473_v21 = vrot.slane %v1415_v34, %v3005_v18  ;;  %v1477_v39 = vrot.slane %v1415_v34, %v3008_v47  ;;  %v1481_v13 = vrot.slane %v1415_v34, %v3014_v45 }
 0x15f   :  { %v1482_v28 = vcombine.low %v1421_v50, %v1425_v54  ;;  %v1483_v29 = vcombine.low %v1429_v27, %v1433_v15  ;;  %v1499_v30 = vcombine.low %v1437_v61, %v1441_v7  ;;  %v1500_v56 = vcombine.low %v1445_v40, %v1449_v2 }
 0x160   :  { %v1516_v41 = vcombine.low %v1453_v11, %v1457_v42  ;;  %v1517_v25 = vcombine.low %v1461_v17, %v1465_v14  ;;  %v1533_v3 = vcombine.low %v1469_v35, %v1473_v21  ;;  %v1534_v38 = vcombine.low %v1477_v39, %v1481_v13 }
 0x161   :  { %v1490_v32 = vrot.slane %v1482_v28, %v2945_v58  ;;  %v1497_v59 = vrot.slane %v1483_v29, %v2945_v58  ;;  %v1507_v10 = vrot.slane %v1499_v30, %v2945_v58  ;;  %v1514_v18 = vrot.slane %v1500_v56, %v2945_v58 }
 0x162   :  { %v1524_v47 = vrot.slane %v1516_v41, %v2945_v58  ;;  %v1531_v45 = vrot.slane %v1517_v25, %v2945_v58  ;;  %v1541_v50 = vrot.slane %v1533_v3, %v2945_v58  ;;  %v1548_v12 = vrot.slane %v1534_v38, %v2945_v58 }
 0x163   :  { %v1498_v57 = vcombine.low %v1490_v32, %v1497_v59  ;;  %v1515_v52 = vcombine.low %v1507_v10, %v1514_v18 }
 0x164   :  { %v1532_v6 = vcombine.low %v1524_v47, %v1531_v45  ;;  %v1549_v43 = vcombine.low %v1541_v50, %v1548_v12 }
 0x165   :  { %v1554_v51 = vadd.f32 %v1498_v57, %v1410_v24  ;;  %v1555_v33 = vadd.f32 %v1515_v52, %v1411_v0 }
 0x166   :  { %v1556_v22 = vadd.f32 %v1532_v6, %v1412_v60  ;;  %v1557_v4 = vadd.f32 %v1549_v43, %v1413_v46 }
 0x167   :  { %1558 = vst [vmem:[#allocation12] sm:$0xff] %v1554_v51  ;;  %1559 = vst [vmem:[#allocation12 + $0x8] sm:$0xff] %v1555_v33 }
 0x168   :  { %1560 = vst [vmem:[#allocation12 + $0x10] sm:$0xff] %v1556_v22  ;;  %1561 = vst [vmem:[#allocation12 + $0x18] sm:$0xff] %v1557_v4 }
 0x169   :  { %1713 = shalt.err (!%p1710_p2)
}
 0x16a   :  { %s1714_s28 = scalar_lea.hbm %s3114_s5, 512 }
 0x16b   :  { %p1715_p3 = scmp.ne.s32.totalorder %s3114_s5, %s1714_s28  ;;  %p1718_p4 = scmp.lt.u32.totalorder %s1714_s28, %s3114_s5 }
 0x16d   :  { %p1720_p5 = pnand %p1718_p4, %p1715_p3 }
 0x16f   :  { %1723 = shalt.err (!%p1720_p5)
}
 0x170   :  { %1571 = dma.vmem_to_hbm [thread:$0]  %s1569_s26, 512, %s3114_s5, [#allocation5]  }
 0x171   :  { %1730 = dma.done.wait [#allocation5], 512  }
 0x172   :  { %1731 = vsyncadd [#allocation5], 4294966784 }
 0x173   :  { %1575 = vsyncpa [#allocation4], 1 }
 0x174   :  { %1576 = vsyncpa [#allocation7], 1 }
 0x175   :  { %1577 = vsyncpa [#allocation10], 1 }
 0x176   :  { %1578 = vsyncpa [#allocation5], 1 }

</bundles_post_ra>
